<compile_context>
chip_gen: v7x
topology: tpu7x:2x2x1
jax: 0.10.0
libtpu: 0.0.40
codegen_flags: <defaults>
</compile_context>

<pallas_src>
import numpy as np
import jax
import jax.numpy as jnp
from jax import lax
from jax.experimental import pallas as pl
from jax.experimental.pallas import tpu as pltpu


def _convgru_kernel(x_ref, h_ref, wx_ref, whg_ref, whc_ref, prm_ref, y_ref,
                    *, eps=1e-6):
    H = x_ref.shape[1]
    WCh = y_ref.shape[2]                       # W * Ch (flattened lane axis)

    x = x_ref[0]                               # (H, W*Cx)
    h = h_ref[0]                               # (H, W*Ch)
    prm = prm_ref[...]                         # (9, W*Ch) packed params

    # Row-shift matrices (implicit zero H-padding of the 3x3 conv):
    #   (sd @ R)[y] = R[y-1] (0 at y=0),  (su @ R)[y] = R[y+1] (0 at y=H-1).
    ri = lax.broadcasted_iota(jnp.int32, (H, H), 0)
    ci = lax.broadcasted_iota(jnp.int32, (H, H), 1)
    sd = jnp.where(ri == ci + 1, 1.0, 0.0)
    su = jnp.where(ri == ci - 1, 1.0, 0.0)

    def conv_rows(lhs, w_ref):
        # 3x3 "same" conv of lhs (H, W*Cin) with banded weights (3, W*Cin, W*Cout).
        r0 = jnp.dot(lhs, w_ref[0], preferred_element_type=jnp.float32)
        r1 = jnp.dot(lhs, w_ref[1], preferred_element_type=jnp.float32)
        r2 = jnp.dot(lhs, w_ref[2], preferred_element_type=jnp.float32)
        return (r1
                + jnp.dot(sd, r0, preferred_element_type=jnp.float32)
                + jnp.dot(su, r2, preferred_element_type=jnp.float32))

    sx = conv_rows(x, wx_ref)                  # (H, 3*W*Ch): [r | u | cand_x]
    sh = conv_rows(h, whg_ref)                 # (H, 2*W*Ch): [r | u]

    def gn(v, gamma, beta):
        # GroupNorm(num_groups=1): stats over the whole (H, W*C) sample,
        # single pass (sum and sum of squares).
        n = float(v.shape[0] * v.shape[1])
        s1 = jnp.sum(v)
        s2 = jnp.sum(v * v)
        mean = s1 / n
        var = jnp.maximum(s2 / n - mean * mean, 0.0)
        return (v - mean) * lax.rsqrt(var + eps) * gamma + beta

    # gates (conv bias added before GroupNorm, matching nn.Conv2d + GroupNorm)
    r_pre = sx[:, :WCh] + sh[:, :WCh] + prm[0:1, :]
    u_pre = sx[:, WCh:2 * WCh] + sh[:, WCh:2 * WCh] + prm[1:2, :]
    r = jax.nn.sigmoid(gn(r_pre, prm[3:4, :], prm[4:5, :]))
    u = jax.nn.sigmoid(gn(u_pre, prm[5:6, :], prm[6:7, :]))

    # candidate: conv(concat(x, r*h)); the x-contribution was fused into sx.
    sc = conv_rows(r * h, whc_ref)             # (H, W*Ch)
    cand = sx[:, 2 * WCh:] + sc + prm[2:3, :]
    cn = jnp.tanh(gn(cand, prm[7:8, :], prm[8:9, :]))

    y_ref[0] = u * h + (1.0 - u) * cn


def _band_matrix(W):
    # band[kx, xi, xo] = 1 iff xi == xo + kx - 1 (valid 3-tap window, "same" pad)
    band = np.zeros((3, W, W), np.float32)
    for kx in range(3):
        for xo in range(W):
            xi = xo + kx - 1
            if 0 <= xi < W:
                band[kx, xi, xo] = 1.0
    return band


def _banded(w_part, band):
    # w_part: (3, 3, Ci, Co) HWIO slice  ->  (3, W*Ci, W*Co) banded matrices.
    Ci, Co = w_part.shape[2], w_part.shape[3]
    W = band.shape[1]
    b = jnp.einsum('kxy,jkco->jxcyo', jnp.asarray(band), w_part)
    return b.reshape(3, W * Ci, W * Co)


def convgru_cell(x, h, params, *, interpret=False):
    """x: (N, H, W, Cx) NHWC f32; h: (N, H, W, Ch) NHWC f32 (or None)."""
    N, H, W, Cx = x.shape
    Ch = params["wo"].shape[-1]
    if h is None:
        h = jnp.zeros((N, H, W, Ch), jnp.float32)

    wg, wo = params["wg"], params["wo"]        # HWIO: (3,3,Cx+Ch,2Ch), (3,3,Cx+Ch,Ch)
    band = _band_matrix(W)

    # x-source weights, outputs fused as [reset | update | candidate_x]
    wx_all = jnp.concatenate([
        _banded(wg[:, :, :Cx, :Ch], band),
        _banded(wg[:, :, :Cx, Ch:], band),
        _banded(wo[:, :, :Cx, :], band),
    ], axis=2)                                 # (3, W*Cx, 3*W*Ch)
    # h-source gate weights, outputs fused as [reset | update]
    wh_ru = jnp.concatenate([
        _banded(wg[:, :, Cx:, :Ch], band),
        _banded(wg[:, :, Cx:, Ch:], band),
    ], axis=2)                                 # (3, W*Ch, 2*W*Ch)
    # (r*h)-source candidate weights
    wh_c = _banded(wo[:, :, Cx:, :], band)     # (3, W*Ch, W*Ch)

    def t(v):                                  # per-channel -> lane-dense (W*Ch,)
        return jnp.tile(v, W)

    prm = jnp.stack([
        t(params["bg"][:Ch]), t(params["bg"][Ch:]), t(params["bo"]),
        t(params["gr"]), t(params["br"]),
        t(params["gu"]), t(params["bu"]),
        t(params["go"]), t(params["bo_n"]),
    ], axis=0)                                 # (9, W*Ch)

    x_flat = x.reshape(N, H, W * Cx)           # lane-dense input views (free)
    h_flat = h.reshape(N, H, W * Ch)

    grid_spec = pltpu.PrefetchScalarGridSpec(
        num_scalar_prefetch=0,
        grid=(N,),
        in_specs=[
            pl.BlockSpec((1, H, W * Cx), lambda i: (i, 0, 0)),
            pl.BlockSpec((1, H, W * Ch), lambda i: (i, 0, 0)),
            pl.BlockSpec((3, W * Cx, 3 * W * Ch), lambda i: (0, 0, 0)),
            pl.BlockSpec((3, W * Ch, 2 * W * Ch), lambda i: (0, 0, 0)),
            pl.BlockSpec((3, W * Ch, W * Ch), lambda i: (0, 0, 0)),
            pl.BlockSpec((9, W * Ch), lambda i: (0, 0)),
        ],
        out_specs=pl.BlockSpec((1, H, W * Ch), lambda i: (i, 0, 0)),
    )

    out = pl.pallas_call(
        _convgru_kernel,
        out_shape=jax.ShapeDtypeStruct((N, H, W * Ch), jnp.float32),
        grid_spec=grid_spec,
        compiler_params=pltpu.CompilerParams(dimension_semantics=("parallel",)),
        interpret=interpret,
    )(x_flat, h_flat, wx_all, wh_ru, wh_c, prm)

    return out.reshape(N, H, W, Ch)


def convgru_ref(x, h, params):
    """Pure-JAX reference matching the PyTorch module semantics (NHWC)."""
    Ch = params["wo"].shape[-1]
    dn = ("NHWC", "HWIO", "NHWC")

    def gn(v, g, b):
        m = jnp.mean(v, axis=(1, 2, 3), keepdims=True)
        var = jnp.mean(jnp.square(v - m), axis=(1, 2, 3), keepdims=True)
        return (v - m) * lax.rsqrt(var + 1e-6) * g + b

    c = jnp.concatenate([x, h], axis=-1)
    f = lax.conv_general_dilated(c, params["wg"], (1, 1), "SAME",
                                 dimension_numbers=dn) + params["bg"]
    r = jax.nn.sigmoid(gn(f[..., :Ch], params["gr"], params["br"]))
    u = jax.nn.sigmoid(gn(f[..., Ch:], params["gu"], params["bu"]))

    q = jnp.concatenate([x, r * h], axis=-1)
    o = lax.conv_general_dilated(q, params["wo"], (1, 1), "SAME",
                                 dimension_numbers=dn) + params["bo"]
    y = jnp.tanh(gn(o, params["go"], params["bo_n"]))
    return u * h + (1.0 - u) * y


if __name__ == "__main__":
    N, H, W = 2, 16, 16
    Cx, Ch = 4, 8          # input_channel=4, output_channel=8
    Cin = Cx + Ch
    key = jax.random.PRNGKey(0)
    ks = jax.random.split(key, 12)

    params = {
        "wg":  0.1 * jax.random.normal(ks[0], (3, 3, Cin, 2 * Ch), jnp.float32),
        "bg":  0.1 * jax.random.normal(ks[1], (2 * Ch,), jnp.float32),
        "wo":  0.1 * jax.random.normal(ks[2], (3, 3, Cin, Ch), jnp.float32),
        "bo":  0.1 * jax.random.normal(ks[3], (Ch,), jnp.float32),
        "gr":  1.0 + 0.1 * jax.random.normal(ks[4], (Ch,), jnp.float32),
        "br":  0.1 * jax.random.normal(ks[5], (Ch,), jnp.float32),
        "gu":  1.0 + 0.1 * jax.random.normal(ks[6], (Ch,), jnp.float32),
        "bu":  0.1 * jax.random.normal(ks[7], (Ch,), jnp.float32),
        "go":  1.0 + 0.1 * jax.random.normal(ks[8], (Ch,), jnp.float32),
        "bo_n": 0.1 * jax.random.normal(ks[9], (Ch,), jnp.float32),
    }
    # NHWC inputs (equivalent PyTorch NCHW shapes: x (2,4,16,16), h (2,8,16,16))
    x = jax.random.normal(ks[10], (N, H, W, Cx), jnp.float32)
    h = jax.random.normal(ks[11], (N, H, W, Ch), jnp.float32)

    y = convgru_cell(x, h, params)
    y = jax.block_until_ready(y)

    y_ref = convgru_ref(x, h, params)
    err = float(jnp.max(jnp.abs(y - y_ref)))
    assert err < 2e-3, f"max abs error vs reference: {err}"

    print("KERNEL_OK")
</pallas_src>

<mosaic_0001>
module attributes {stable_mosaic.version = 11 : i64} {
  func.func @_convgru_kernel(%arg0: i32, %arg1: memref<1x16x64xf32, #tpu.memory_space<vmem>>, %arg2: memref<1x16x128xf32, #tpu.memory_space<vmem>>, %arg3: memref<3x64x384xf32, #tpu.memory_space<vmem>>, %arg4: memref<3x128x256xf32, #tpu.memory_space<vmem>>, %arg5: memref<3x128x128xf32, #tpu.memory_space<vmem>>, %arg6: memref<9x128xf32, #tpu.memory_space<vmem>>, %arg7: memref<1x16x128xf32, #tpu.memory_space<vmem>>) attributes {dimension_semantics = [#tpu.dimension_semantics<parallel>], iteration_bounds = array<i64: 2>, scalar_prefetch = 0 : i64, scratch_operands = 0 : i64, tpu.core_type = #tpu.core_type<tc>, window_params = [{transform_indices = @transform_0, window_bounds = array<i64: 1, 16, 64>}, {transform_indices = @transform_1, window_bounds = array<i64: 1, 16, 128>}, {pipeline_mode = #tpu.pipeline_mode<synchronous>, transform_indices = @transform_2, window_bounds = array<i64: 3, 64, 384>}, {pipeline_mode = #tpu.pipeline_mode<synchronous>, transform_indices = @transform_3, window_bounds = array<i64: 3, 128, 256>}, {pipeline_mode = #tpu.pipeline_mode<synchronous>, transform_indices = @transform_4, window_bounds = array<i64: 3, 128, 128>}, {pipeline_mode = #tpu.pipeline_mode<synchronous>, transform_indices = @transform_5, window_bounds = array<i64: 9, 128>}, {transform_indices = @transform_6, window_bounds = array<i64: 1, 16, 128>}]} {
    %c0 = arith.constant 0 : index
    %c0_0 = arith.constant 0 : index
    %c0_1 = arith.constant 0 : index
    %0 = vector.load %arg1[%c0, %c0_0, %c0_1] : memref<1x16x64xf32, #tpu.memory_space<vmem>>, vector<1x16x64xf32>
    %1 = vector.shape_cast %0 : vector<1x16x64xf32> to vector<16x64xf32>
    %c0_2 = arith.constant 0 : index
    %c0_3 = arith.constant 0 : index
    %c0_4 = arith.constant 0 : index
    %2 = vector.load %arg2[%c0_2, %c0_3, %c0_4] : memref<1x16x128xf32, #tpu.memory_space<vmem>>, vector<1x16x128xf32>
    %3 = vector.shape_cast %2 : vector<1x16x128xf32> to vector<16x128xf32>
    %c0_5 = arith.constant 0 : index
    %c0_6 = arith.constant 0 : index
    %4 = vector.load %arg6[%c0_5, %c0_6] : memref<9x128xf32, #tpu.memory_space<vmem>>, vector<9x128xf32>
    %5 = tpu.iota {dimensions = array<i32: 0>} : vector<16x16xi32>
    %6 = tpu.iota {dimensions = array<i32: 1>} : vector<16x16xi32>
    %c1_i32 = arith.constant 1 : i32
    %7 = vector.broadcast %c1_i32 : i32 to vector<16x16xi32>
    %8 = arith.addi %6, %7 : vector<16x16xi32>
    %9 = arith.cmpi eq, %5, %8 : vector<16x16xi32>
    %cst = arith.constant 1.000000e+00 : f32
    %cst_7 = arith.constant 0.000000e+00 : f32
    %10 = vector.broadcast %cst : f32 to vector<16x16xf32>
    %11 = vector.broadcast %cst_7 : f32 to vector<16x16xf32>
    %12 = arith.select %9, %10, %11 : vector<16x16xi1>, vector<16x16xf32>
    %c1_i32_8 = arith.constant 1 : i32
    %13 = vector.broadcast %c1_i32_8 : i32 to vector<16x16xi32>
    %14 = arith.subi %6, %13 : vector<16x16xi32>
    %15 = arith.cmpi eq, %5, %14 : vector<16x16xi32>
    %cst_9 = arith.constant 1.000000e+00 : f32
    %cst_10 = arith.constant 0.000000e+00 : f32
    %16 = vector.broadcast %cst_9 : f32 to vector<16x16xf32>
    %17 = vector.broadcast %cst_10 : f32 to vector<16x16xf32>
    %18 = arith.select %15, %16, %17 : vector<16x16xi1>, vector<16x16xf32>
    %c0_11 = arith.constant 0 : index
    %c0_12 = arith.constant 0 : index
    %c0_13 = arith.constant 0 : index
    %19 = vector.load %arg3[%c0_11, %c0_12, %c0_13] : memref<3x64x384xf32, #tpu.memory_space<vmem>>, vector<1x64x384xf32>
    %20 = vector.shape_cast %19 : vector<1x64x384xf32> to vector<64x384xf32>
    %cst_14 = arith.constant dense<0.000000e+00> : vector<16x384xf32>
    %21 = tpu.matmul %1, %20, %cst_14 {dimension_numbers = #tpu.dot_dimension_numbers<[1], [0], [0], [1], [0, 0, 1, 1], [], []>} : vector<16x64xf32>, vector<64x384xf32>, vector<16x384xf32> -> vector<16x384xf32>
    %c1 = arith.constant 1 : index
    %c0_15 = arith.constant 0 : index
    %c0_16 = arith.constant 0 : index
    %22 = vector.load %arg3[%c1, %c0_15, %c0_16] : memref<3x64x384xf32, #tpu.memory_space<vmem>>, vector<1x64x384xf32>
    %23 = vector.shape_cast %22 : vector<1x64x384xf32> to vector<64x384xf32>
    %cst_17 = arith.constant dense<0.000000e+00> : vector<16x384xf32>
    %24 = tpu.matmul %1, %23, %cst_17 {dimension_numbers = #tpu.dot_dimension_numbers<[1], [0], [0], [1], [0, 0, 1, 1], [], []>} : vector<16x64xf32>, vector<64x384xf32>, vector<16x384xf32> -> vector<16x384xf32>
    %c2 = arith.constant 2 : index
    %c0_18 = arith.constant 0 : index
    %c0_19 = arith.constant 0 : index
    %25 = vector.load %arg3[%c2, %c0_18, %c0_19] : memref<3x64x384xf32, #tpu.memory_space<vmem>>, vector<1x64x384xf32>
    %26 = vector.shape_cast %25 : vector<1x64x384xf32> to vector<64x384xf32>
    %cst_20 = arith.constant dense<0.000000e+00> : vector<16x384xf32>
    %27 = tpu.matmul %1, %26, %cst_20 {dimension_numbers = #tpu.dot_dimension_numbers<[1], [0], [0], [1], [0, 0, 1, 1], [], []>} : vector<16x64xf32>, vector<64x384xf32>, vector<16x384xf32> -> vector<16x384xf32>
    %cst_21 = arith.constant dense<0.000000e+00> : vector<16x384xf32>
    %28 = tpu.matmul %12, %21, %cst_21 {dimension_numbers = #tpu.dot_dimension_numbers<[1], [0], [0], [1], [0, 0, 1, 1], [], []>} : vector<16x16xf32>, vector<16x384xf32>, vector<16x384xf32> -> vector<16x384xf32>
    %29 = arith.addf %24, %28 : vector<16x384xf32>
    %cst_22 = arith.constant dense<0.000000e+00> : vector<16x384xf32>
    %30 = tpu.matmul %18, %27, %cst_22 {dimension_numbers = #tpu.dot_dimension_numbers<[1], [0], [0], [1], [0, 0, 1, 1], [], []>} : vector<16x16xf32>, vector<16x384xf32>, vector<16x384xf32> -> vector<16x384xf32>
    %31 = arith.addf %29, %30 : vector<16x384xf32>
    %c0_23 = arith.constant 0 : index
    %c0_24 = arith.constant 0 : index
    %c0_25 = arith.constant 0 : index
    %32 = vector.load %arg4[%c0_23, %c0_24, %c0_25] : memref<3x128x256xf32, #tpu.memory_space<vmem>>, vector<1x128x256xf32>
    %33 = vector.shape_cast %32 : vector<1x128x256xf32> to vector<128x256xf32>
    %cst_26 = arith.constant dense<0.000000e+00> : vector<16x256xf32>
    %34 = tpu.matmul %3, %33, %cst_26 {dimension_numbers = #tpu.dot_dimension_numbers<[1], [0], [0], [1], [0, 0, 1, 1], [], []>} : vector<16x128xf32>, vector<128x256xf32>, vector<16x256xf32> -> vector<16x256xf32>
    %c1_27 = arith.constant 1 : index
    %c0_28 = arith.constant 0 : index
    %c0_29 = arith.constant 0 : index
    %35 = vector.load %arg4[%c1_27, %c0_28, %c0_29] : memref<3x128x256xf32, #tpu.memory_space<vmem>>, vector<1x128x256xf32>
    %36 = vector.shape_cast %35 : vector<1x128x256xf32> to vector<128x256xf32>
    %cst_30 = arith.constant dense<0.000000e+00> : vector<16x256xf32>
    %37 = tpu.matmul %3, %36, %cst_30 {dimension_numbers = #tpu.dot_dimension_numbers<[1], [0], [0], [1], [0, 0, 1, 1], [], []>} : vector<16x128xf32>, vector<128x256xf32>, vector<16x256xf32> -> vector<16x256xf32>
    %c2_31 = arith.constant 2 : index
    %c0_32 = arith.constant 0 : index
    %c0_33 = arith.constant 0 : index
    %38 = vector.load %arg4[%c2_31, %c0_32, %c0_33] : memref<3x128x256xf32, #tpu.memory_space<vmem>>, vector<1x128x256xf32>
    %39 = vector.shape_cast %38 : vector<1x128x256xf32> to vector<128x256xf32>
    %cst_34 = arith.constant dense<0.000000e+00> : vector<16x256xf32>
    %40 = tpu.matmul %3, %39, %cst_34 {dimension_numbers = #tpu.dot_dimension_numbers<[1], [0], [0], [1], [0, 0, 1, 1], [], []>} : vector<16x128xf32>, vector<128x256xf32>, vector<16x256xf32> -> vector<16x256xf32>
    %cst_35 = arith.constant dense<0.000000e+00> : vector<16x256xf32>
    %41 = tpu.matmul %12, %34, %cst_35 {dimension_numbers = #tpu.dot_dimension_numbers<[1], [0], [0], [1], [0, 0, 1, 1], [], []>} : vector<16x16xf32>, vector<16x256xf32>, vector<16x256xf32> -> vector<16x256xf32>
    %42 = arith.addf %37, %41 : vector<16x256xf32>
    %cst_36 = arith.constant dense<0.000000e+00> : vector<16x256xf32>
    %43 = tpu.matmul %18, %40, %cst_36 {dimension_numbers = #tpu.dot_dimension_numbers<[1], [0], [0], [1], [0, 0, 1, 1], [], []>} : vector<16x16xf32>, vector<16x256xf32>, vector<16x256xf32> -> vector<16x256xf32>
    %44 = arith.addf %42, %43 : vector<16x256xf32>
    %45 = vector.extract_strided_slice %31 {offsets = [0, 0], sizes = [16, 128], strides = [1, 1]} : vector<16x384xf32> to vector<16x128xf32>
    %46 = vector.extract_strided_slice %44 {offsets = [0, 0], sizes = [16, 128], strides = [1, 1]} : vector<16x256xf32> to vector<16x128xf32>
    %47 = arith.addf %45, %46 : vector<16x128xf32>
    %48 = vector.extract_strided_slice %4 {offsets = [0, 0], sizes = [1, 128], strides = [1, 1]} : vector<9x128xf32> to vector<1x128xf32>
    %49 = vector.broadcast %48 : vector<1x128xf32> to vector<16x128xf32>
    %50 = arith.addf %47, %49 : vector<16x128xf32>
    %51 = vector.extract_strided_slice %31 {offsets = [0, 128], sizes = [16, 128], strides = [1, 1]} : vector<16x384xf32> to vector<16x128xf32>
    %52 = vector.extract_strided_slice %44 {offsets = [0, 128], sizes = [16, 128], strides = [1, 1]} : vector<16x256xf32> to vector<16x128xf32>
    %53 = arith.addf %51, %52 : vector<16x128xf32>
    %54 = vector.extract_strided_slice %4 {offsets = [1, 0], sizes = [1, 128], strides = [1, 1]} : vector<9x128xf32> to vector<1x128xf32>
    %55 = vector.broadcast %54 : vector<1x128xf32> to vector<16x128xf32>
    %56 = arith.addf %53, %55 : vector<16x128xf32>
    %57 = vector.extract_strided_slice %4 {offsets = [3, 0], sizes = [1, 128], strides = [1, 1]} : vector<9x128xf32> to vector<1x128xf32>
    %58 = vector.extract_strided_slice %4 {offsets = [4, 0], sizes = [1, 128], strides = [1, 1]} : vector<9x128xf32> to vector<1x128xf32>
    %59 = vector.shape_cast %50 : vector<16x128xf32> to vector<1x16x128xf32>
    %cst_37 = arith.constant dense<0.000000e+00> : vector<1xf32>
    %60 = vector.multi_reduction <add>, %59, %cst_37 [1, 2] : vector<1x16x128xf32> to vector<1xf32>
    %61 = vector.shape_cast %60 : vector<1xf32> to vector<1x1x1xf32>
    %62 = vector.extract %61[0, 0, 0] : f32 from vector<1x1x1xf32>
    %63 = arith.mulf %50, %50 : vector<16x128xf32>
    %64 = vector.shape_cast %63 : vector<16x128xf32> to vector<1x16x128xf32>
    %cst_38 = arith.constant dense<0.000000e+00> : vector<1xf32>
    %65 = vector.multi_reduction <add>, %64, %cst_38 [1, 2] : vector<1x16x128xf32> to vector<1xf32>
    %66 = vector.shape_cast %65 : vector<1xf32> to vector<1x1x1xf32>
    %67 = vector.extract %66[0, 0, 0] : f32 from vector<1x1x1xf32>
    %cst_39 = arith.constant 2.048000e+03 : f32
    %68 = arith.divf %62, %cst_39 : f32
    %cst_40 = arith.constant 2.048000e+03 : f32
    %69 = arith.divf %67, %cst_40 : f32
    %70 = arith.mulf %68, %68 : f32
    %71 = arith.subf %69, %70 : f32
    %cst_41 = arith.constant 0.000000e+00 : f32
    %72 = arith.maximumf %71, %cst_41 : f32
    %73 = vector.broadcast %68 : f32 to vector<16x128xf32>
    %74 = arith.subf %50, %73 : vector<16x128xf32>
    %cst_42 = arith.constant 9.99999997E-7 : f32
    %75 = arith.addf %72, %cst_42 : f32
    %76 = math.rsqrt %75 : f32
    %77 = vector.broadcast %76 : f32 to vector<16x128xf32>
    %78 = arith.mulf %74, %77 : vector<16x128xf32>
    %79 = vector.broadcast %57 : vector<1x128xf32> to vector<16x128xf32>
    %80 = arith.mulf %78, %79 : vector<16x128xf32>
    %81 = vector.broadcast %58 : vector<1x128xf32> to vector<16x128xf32>
    %82 = arith.addf %80, %81 : vector<16x128xf32>
    %83 = arith.negf %82 : vector<16x128xf32>
    %84 = math.exp %83 : vector<16x128xf32>
    %cst_43 = arith.constant 1.000000e+00 : f32
    %85 = vector.broadcast %cst_43 : f32 to vector<16x128xf32>
    %86 = arith.addf %85, %84 : vector<16x128xf32>
    %87 = arith.divf %85, %86 : vector<16x128xf32>
    %88 = vector.extract_strided_slice %4 {offsets = [5, 0], sizes = [1, 128], strides = [1, 1]} : vector<9x128xf32> to vector<1x128xf32>
    %89 = vector.extract_strided_slice %4 {offsets = [6, 0], sizes = [1, 128], strides = [1, 1]} : vector<9x128xf32> to vector<1x128xf32>
    %90 = vector.shape_cast %56 : vector<16x128xf32> to vector<1x16x128xf32>
    %cst_44 = arith.constant dense<0.000000e+00> : vector<1xf32>
    %91 = vector.multi_reduction <add>, %90, %cst_44 [1, 2] : vector<1x16x128xf32> to vector<1xf32>
    %92 = vector.shape_cast %91 : vector<1xf32> to vector<1x1x1xf32>
    %93 = vector.extract %92[0, 0, 0] : f32 from vector<1x1x1xf32>
    %94 = arith.mulf %56, %56 : vector<16x128xf32>
    %95 = vector.shape_cast %94 : vector<16x128xf32> to vector<1x16x128xf32>
    %cst_45 = arith.constant dense<0.000000e+00> : vector<1xf32>
    %96 = vector.multi_reduction <add>, %95, %cst_45 [1, 2] : vector<1x16x128xf32> to vector<1xf32>
    %97 = vector.shape_cast %96 : vector<1xf32> to vector<1x1x1xf32>
    %98 = vector.extract %97[0, 0, 0] : f32 from vector<1x1x1xf32>
    %cst_46 = arith.constant 2.048000e+03 : f32
    %99 = arith.divf %93, %cst_46 : f32
    %cst_47 = arith.constant 2.048000e+03 : f32
    %100 = arith.divf %98, %cst_47 : f32
    %101 = arith.mulf %99, %99 : f32
    %102 = arith.subf %100, %101 : f32
    %cst_48 = arith.constant 0.000000e+00 : f32
    %103 = arith.maximumf %102, %cst_48 : f32
    %104 = vector.broadcast %99 : f32 to vector<16x128xf32>
    %105 = arith.subf %56, %104 : vector<16x128xf32>
    %cst_49 = arith.constant 9.99999997E-7 : f32
    %106 = arith.addf %103, %cst_49 : f32
    %107 = math.rsqrt %106 : f32
    %108 = vector.broadcast %107 : f32 to vector<16x128xf32>
    %109 = arith.mulf %105, %108 : vector<16x128xf32>
    %110 = vector.broadcast %88 : vector<1x128xf32> to vector<16x128xf32>
    %111 = arith.mulf %109, %110 : vector<16x128xf32>
    %112 = vector.broadcast %89 : vector<1x128xf32> to vector<16x128xf32>
    %113 = arith.addf %111, %112 : vector<16x128xf32>
    %114 = arith.negf %113 : vector<16x128xf32>
    %115 = math.exp %114 : vector<16x128xf32>
    %cst_50 = arith.constant 1.000000e+00 : f32
    %116 = vector.broadcast %cst_50 : f32 to vector<16x128xf32>
    %117 = arith.addf %116, %115 : vector<16x128xf32>
    %118 = arith.divf %116, %117 : vector<16x128xf32>
    %119 = arith.mulf %87, %3 : vector<16x128xf32>
    %c0_51 = arith.constant 0 : index
    %c0_52 = arith.constant 0 : index
    %c0_53 = arith.constant 0 : index
    %120 = vector.load %arg5[%c0_51, %c0_52, %c0_53] : memref<3x128x128xf32, #tpu.memory_space<vmem>>, vector<1x128x128xf32>
    %121 = vector.shape_cast %120 : vector<1x128x128xf32> to vector<128x128xf32>
    %cst_54 = arith.constant dense<0.000000e+00> : vector<16x128xf32>
    %122 = tpu.matmul %119, %121, %cst_54 {dimension_numbers = #tpu.dot_dimension_numbers<[1], [0], [0], [1], [0, 0, 1, 1], [], []>} : vector<16x128xf32>, vector<128x128xf32>, vector<16x128xf32> -> vector<16x128xf32>
    %c1_55 = arith.constant 1 : index
    %c0_56 = arith.constant 0 : index
    %c0_57 = arith.constant 0 : index
    %123 = vector.load %arg5[%c1_55, %c0_56, %c0_57] : memref<3x128x128xf32, #tpu.memory_space<vmem>>, vector<1x128x128xf32>
    %124 = vector.shape_cast %123 : vector<1x128x128xf32> to vector<128x128xf32>
    %cst_58 = arith.constant dense<0.000000e+00> : vector<16x128xf32>
    %125 = tpu.matmul %119, %124, %cst_58 {dimension_numbers = #tpu.dot_dimension_numbers<[1], [0], [0], [1], [0, 0, 1, 1], [], []>} : vector<16x128xf32>, vector<128x128xf32>, vector<16x128xf32> -> vector<16x128xf32>
    %c2_59 = arith.constant 2 : index
    %c0_60 = arith.constant 0 : index
    %c0_61 = arith.constant 0 : index
    %126 = vector.load %arg5[%c2_59, %c0_60, %c0_61] : memref<3x128x128xf32, #tpu.memory_space<vmem>>, vector<1x128x128xf32>
    %127 = vector.shape_cast %126 : vector<1x128x128xf32> to vector<128x128xf32>
    %cst_62 = arith.constant dense<0.000000e+00> : vector<16x128xf32>
    %128 = tpu.matmul %119, %127, %cst_62 {dimension_numbers = #tpu.dot_dimension_numbers<[1], [0], [0], [1], [0, 0, 1, 1], [], []>} : vector<16x128xf32>, vector<128x128xf32>, vector<16x128xf32> -> vector<16x128xf32>
    %cst_63 = arith.constant dense<0.000000e+00> : vector<16x128xf32>
    %129 = tpu.matmul %12, %122, %cst_63 {dimension_numbers = #tpu.dot_dimension_numbers<[1], [0], [0], [1], [0, 0, 1, 1], [], []>} : vector<16x16xf32>, vector<16x128xf32>, vector<16x128xf32> -> vector<16x128xf32>
    %130 = arith.addf %125, %129 : vector<16x128xf32>
    %cst_64 = arith.constant dense<0.000000e+00> : vector<16x128xf32>
    %131 = tpu.matmul %18, %128, %cst_64 {dimension_numbers = #tpu.dot_dimension_numbers<[1], [0], [0], [1], [0, 0, 1, 1], [], []>} : vector<16x16xf32>, vector<16x128xf32>, vector<16x128xf32> -> vector<16x128xf32>
    %132 = arith.addf %130, %131 : vector<16x128xf32>
    %133 = vector.extract_strided_slice %31 {offsets = [0, 256], sizes = [16, 128], strides = [1, 1]} : vector<16x384xf32> to vector<16x128xf32>
    %134 = arith.addf %133, %132 : vector<16x128xf32>
    %135 = vector.extract_strided_slice %4 {offsets = [2, 0], sizes = [1, 128], strides = [1, 1]} : vector<9x128xf32> to vector<1x128xf32>
    %136 = vector.broadcast %135 : vector<1x128xf32> to vector<16x128xf32>
    %137 = arith.addf %134, %136 : vector<16x128xf32>
    %138 = vector.extract_strided_slice %4 {offsets = [7, 0], sizes = [1, 128], strides = [1, 1]} : vector<9x128xf32> to vector<1x128xf32>
    %139 = vector.extract_strided_slice %4 {offsets = [8, 0], sizes = [1, 128], strides = [1, 1]} : vector<9x128xf32> to vector<1x128xf32>
    %140 = vector.shape_cast %137 : vector<16x128xf32> to vector<1x16x128xf32>
    %cst_65 = arith.constant dense<0.000000e+00> : vector<1xf32>
    %141 = vector.multi_reduction <add>, %140, %cst_65 [1, 2] : vector<1x16x128xf32> to vector<1xf32>
    %142 = vector.shape_cast %141 : vector<1xf32> to vector<1x1x1xf32>
    %143 = vector.extract %142[0, 0, 0] : f32 from vector<1x1x1xf32>
    %144 = arith.mulf %137, %137 : vector<16x128xf32>
    %145 = vector.shape_cast %144 : vector<16x128xf32> to vector<1x16x128xf32>
    %cst_66 = arith.constant dense<0.000000e+00> : vector<1xf32>
    %146 = vector.multi_reduction <add>, %145, %cst_66 [1, 2] : vector<1x16x128xf32> to vector<1xf32>
    %147 = vector.shape_cast %146 : vector<1xf32> to vector<1x1x1xf32>
    %148 = vector.extract %147[0, 0, 0] : f32 from vector<1x1x1xf32>
    %cst_67 = arith.constant 2.048000e+03 : f32
    %149 = arith.divf %143, %cst_67 : f32
    %cst_68 = arith.constant 2.048000e+03 : f32
    %150 = arith.divf %148, %cst_68 : f32
    %151 = arith.mulf %149, %149 : f32
    %152 = arith.subf %150, %151 : f32
    %cst_69 = arith.constant 0.000000e+00 : f32
    %153 = arith.maximumf %152, %cst_69 : f32
    %154 = vector.broadcast %149 : f32 to vector<16x128xf32>
    %155 = arith.subf %137, %154 : vector<16x128xf32>
    %cst_70 = arith.constant 9.99999997E-7 : f32
    %156 = arith.addf %153, %cst_70 : f32
    %157 = math.rsqrt %156 : f32
    %158 = vector.broadcast %157 : f32 to vector<16x128xf32>
    %159 = arith.mulf %155, %158 : vector<16x128xf32>
    %160 = vector.broadcast %138 : vector<1x128xf32> to vector<16x128xf32>
    %161 = arith.mulf %159, %160 : vector<16x128xf32>
    %162 = vector.broadcast %139 : vector<1x128xf32> to vector<16x128xf32>
    %163 = arith.addf %161, %162 : vector<16x128xf32>
    %164 = math.tanh %163 : vector<16x128xf32>
    %165 = arith.mulf %118, %3 : vector<16x128xf32>
    %cst_71 = arith.constant 1.000000e+00 : f32
    %166 = vector.broadcast %cst_71 : f32 to vector<16x128xf32>
    %167 = arith.subf %166, %118 : vector<16x128xf32>
    %168 = arith.mulf %167, %164 : vector<16x128xf32>
    %169 = arith.addf %165, %168 : vector<16x128xf32>
    %c0_72 = arith.constant 0 : index
    %c0_73 = arith.constant 0 : index
    %c0_74 = arith.constant 0 : index
    %170 = vector.load %arg7[%c0_72, %c0_73, %c0_74] : memref<1x16x128xf32, #tpu.memory_space<vmem>>, vector<1x16x128xf32>
    %171 = vector.shape_cast %170 : vector<1x16x128xf32> to vector<16x128xf32>
    %172 = vector.shape_cast %169 : vector<16x128xf32> to vector<1x16x128xf32>
    tpu.vector_store %arg7[%c0_72, %c0_73, %c0_74], %172 {strides = array<i32>} : memref<1x16x128xf32, #tpu.memory_space<vmem>>, vector<1x16x128xf32>,
    return
  }
  func.func @transform_0(%arg0: i32) -> (i32, i32, i32) {
    %c0_i32 = arith.constant 0 : i32
    %c0_i32_0 = arith.constant 0 : i32
    %c0_i32_1 = arith.constant 0 : i32
    return %arg0, %c0_i32, %c0_i32_0 : i32, i32, i32
  }
  func.func @transform_1(%arg0: i32) -> (i32, i32, i32) {
    %c0_i32 = arith.constant 0 : i32
    %c0_i32_0 = arith.constant 0 : i32
    %c0_i32_1 = arith.constant 0 : i32
    return %arg0, %c0_i32, %c0_i32_0 : i32, i32, i32
  }
  func.func @transform_2(%arg0: i32) -> (i32, i32, i32) {
    %c0_i32 = arith.constant 0 : i32
    %c0_i32_0 = arith.constant 0 : i32
    %c0_i32_1 = arith.constant 0 : i32
    %c0_i32_2 = arith.constant 0 : i32
    return %c0_i32, %c0_i32_0, %c0_i32_1 : i32, i32, i32
  }
  func.func @transform_3(%arg0: i32) -> (i32, i32, i32) {
    %c0_i32 = arith.constant 0 : i32
    %c0_i32_0 = arith.constant 0 : i32
    %c0_i32_1 = arith.constant 0 : i32
    %c0_i32_2 = arith.constant 0 : i32
    return %c0_i32, %c0_i32_0, %c0_i32_1 : i32, i32, i32
  }
  func.func @transform_4(%arg0: i32) -> (i32, i32, i32) {
    %c0_i32 = arith.constant 0 : i32
    %c0_i32_0 = arith.constant 0 : i32
    %c0_i32_1 = arith.constant 0 : i32
    %c0_i32_2 = arith.constant 0 : i32
    return %c0_i32, %c0_i32_0, %c0_i32_1 : i32, i32, i32
  }
  func.func @transform_5(%arg0: i32) -> (i32, i32) {
    %c0_i32 = arith.constant 0 : i32
    %c0_i32_0 = arith.constant 0 : i32
    %c0_i32_1 = arith.constant 0 : i32
    return %c0_i32, %c0_i32_0 : i32, i32
  }
  func.func @transform_6(%arg0: i32) -> (i32, i32, i32) {
    %c0_i32 = arith.constant 0 : i32
    %c0_i32_0 = arith.constant 0 : i32
    %c0_i32_1 = arith.constant 0 : i32
    return %arg0, %c0_i32, %c0_i32_0 : i32, i32, i32
  }
}

</mosaic_0001>

<bundles_post_ra>
// kernel: tpu_custom_call.1
= control target key start
LH: loop header
LB: loop body
LE: loop exit
PB: predicated region body
PF: predicated region fallthrough
CT: control target
= control target key end

     0   :  { %s4119_s0 = inlined_call_operand.hbm [shape: f32[2,16,64], index: 0, kind: input, shape index: {}]   ;;  %s4120_s1 = inlined_call_operand.hbm [shape: f32[2,16,128], index: 1, kind: input, shape index: {}]   ;;  %s4121_s2 = inlined_call_operand.hbm [shape: f32[3,64,384], index: 2, kind: input, shape index: {}]   ;;  %s4122_s3 = inlined_call_operand.hbm [shape: f32[3,128,256], index: 3, kind: input, shape index: {}]   ;;  %s4123_s4 = inlined_call_operand.hbm [shape: f32[3,128,128], index: 4, kind: input, shape index: {}]   ;;  %s4124_s5 = inlined_call_operand.vmem [shape: f32[9,128], index: 5, kind: input, shape index: {}]   ;;  %s4125_s6 = inlined_call_operand.hbm [shape: f32[2,16,128], index: 6, kind: output, shape index: {}]  }
   0x1   :  { %4133 = sst [smem:[#allocation18_spill]] %s4119_s0 }
   0x2   :  { %4134 = sst [smem:[#allocation19_spill]] %s4121_s2 }
   0x3   :  { %4135 = sst [smem:[#allocation20_spill]] %s4122_s3 }
   0x4   :  { %4136 = sst [smem:[#allocation21_spill]] %s4123_s4 }
   0x5   :  { %11 = vsyncpa [#allocation3], 0 }
   0x6   :  { %13 = vsyncpa [#allocation3 + $0x1], 0 }
   0x7   :  { %14 = vsyncpa [#allocation6], 0 }
   0x8   :  { %16 = vsyncpa [#allocation6 + $0x1], 0 }
   0x9   :  { %17 = vsyncpa [#allocation9], 0 }
   0xa   :  { %18 = vsyncpa [#allocation4], 0 }
   0xb   :  { %20 = vsyncpa [#allocation4 + $0x1], 0  ;;  %s3619_s21 = smov 0   ;;  %s3621_s22 = smov 0  }
   0xc   :  { %s3623_s23 = smov 0   ;;  %s3625_s24 = smov 0  }
   0xd LB: > { %s3640_s25 = sadd.s32 4294967295, %s3566_s24   ;;  %s2507_s26 = sadd.s32 4294967294, %s3566_s24   ;;  %s3566_s24 = sphi %s3625_s24, %s4164_s24   ;;  %s3562_s23 = sphi %s3623_s23, %s4163_s23   ;;  %s3558_s22 = sphi %s3621_s22, %s4162_s22   ;;  %s3554_s21 = sphi %s3619_s21, %s4161_s21  }
   0xe   : > { %p46_p0 = scmp.ne.s32.totalorder %s3558_s22, %s3554_s21  ;;  %p4126_p1 = scmp.eq.s32.totalorder %s3640_s25, 0 }
   0xf   : > { %p186_p3 = scmp.eq.s32.totalorder %s2507_s26, 1  ;;  %p2508_p5 = scmp.ge.s32.totalorder %s3566_s24, 1 }
  0x10   : > { %p3649_p4 = por %p4126_p1, %p46_p0  ;;  %p193_p7 = scmp.lt.s32.totalorder %s3566_s24, 3 }
  0x11   : > { %p3654_p6 = por %p186_p3, %p46_p0  ;;  %s3568_s30 = smov [#allocation7]  }
  0x12   : > { %s4137_s27 = scalar_select %p3649_p4, 1, 0 }
  0x13   : > { %s4138_s28 = scalar_select %p3654_p6, 1, 0 }
  0x14   : > { %p3659_p8 = pnand %p2508_p5, %p193_p7  ;;  %s205_s7 = sshll.u32 %s3568_s30, 4  ;;  %s3663_s7 = int_to_ptr.vmem [resolvable:$true] %s205_s7 }
  0x15   : > { %s3569_s9 = smov [#allocation8]   ;;  %s4141_s2 = sld [smem:[#allocation19_spill]] }
  0x16   : > { %s4139_s29 = scalar_select %p3659_p8, 1, 0 }
  0x17   : > { %p3244_p9 = pneg %p3659_p8  ;;  %s218_s10 = sshll.u32 %s3569_s9, 4  ;;  %s3674_s10 = int_to_ptr.vmem [resolvable:$true] %s218_s10 }
  0x19   : > { %p3670_p11 = pnand %p3244_p9, %p4126_p1 }
  0x1b   : > { %s3344_s13 = scalar_lea.hbm %s4141_s2, 9216  ;;  %p3684_p13 = pneg %p3670_p11 }
  0x1c   : > { %p3345_p12 = scmp.ne.s32.totalorder %s4141_s2, %s3344_s13  ;;  %p3351_p5 = scmp.lt.u32.totalorder %s3344_s13, %s4141_s2 }
  0x1e   : > { %p3347_p0 = pnand %p3684_p13, %p3345_p12 }
  0x20   : > { %p3348_p3 = pneg %p3347_p0 }
  0x22   : > { %p3353_p7 = pnand %p3351_p5, %p3348_p3 }
  0x24   : > { %3356 = shalt.err (!%p3353_p7)
}
  0x25   : > { %s3357_s19 = scalar_lea.vmem %s3663_s7, 9216  ;;  %p3365_p2 = scmp.lt.s32.totalorder %s3663_s7, %s3663_s7 }
  0x26   : > { %p3358_p9 = scmp.ne.s32.totalorder %s3663_s7, %s3357_s19  ;;  %p3366_p6 = scmp.lt.s32.totalorder %s3357_s19, %s3357_s19 }
  0x28   : > { %p3360_p10 = pnand %p3358_p9, %p3684_p13  ;;  %p3367_p12 = por %p3366_p6, %p3365_p2 }
  0x2a   : > { %p3361_p1 = pneg %p3360_p10 }
  0x2c   : > { %p3368_p0 = pnand %p3367_p12, %p3361_p1 }
  0x2e   : > { %3371 = shalt.err (!%p3368_p0)
}
  0x2f   : > { %s3570_s20 = smov 384   ;;  %s3571_s26 = smov 24  }
  0x30   : > { %3247 = dma.hbm_to_vmem [thread:$0]  (!%p3670_p11), %s4141_s2, 9216, %s3663_s7, [#allocation6], %s3570_s20, %s3570_s20, %s3571_s26  }
  0x31   : > { %s4143_s3 = sld [smem:[#allocation20_spill]] }
  0x37   : > { %s3372_s13 = scalar_lea.hbm %s4143_s3, 12288 }
  0x38   : > { %p3373_p2 = scmp.ne.s32.totalorder %s4143_s3, %s3372_s13  ;;  %p3379_p10 = scmp.lt.u32.totalorder %s3372_s13, %s4143_s3 }
  0x3a   : > { %p3375_p1 = pnand %p3373_p2, %p3684_p13 }
  0x3c   : > { %p3376_p6 = pneg %p3375_p1 }
  0x3e   : > { %p3381_p3 = pnand %p3379_p10, %p3376_p6 }
  0x40   : > { %3384 = shalt.err (!%p3381_p3)
}
  0x41   : > { %s3385_s7 = scalar_lea.vmem %s3674_s10, 12288  ;;  %p3393_p12 = scmp.lt.s32.totalorder %s3674_s10, %s3674_s10 }
  0x42   : > { %p3386_p5 = scmp.ne.s32.totalorder %s3674_s10, %s3385_s7  ;;  %p3394_p0 = scmp.lt.s32.totalorder %s3385_s7, %s3385_s7 }
  0x44   : > { %p3388_p7 = pnand %p3386_p5, %p3684_p13  ;;  %p3395_p2 = por %p3394_p0, %p3393_p12 }
  0x46   : > { %p3389_p9 = pneg %p3388_p7 }
  0x48   : > { %p3396_p1 = pnand %p3395_p2, %p3389_p9 }
  0x4a   : > { %3399 = shalt.err (!%p3396_p1)
}
  0x4b   : > { %s3572_s19 = smov 256   ;;  %s3573_s20 = smov 16  }
  0x4c   : > { %3250 = dma.hbm_to_vmem [thread:$0]  (!%p3670_p11), %s4143_s3, 12288, %s3674_s10, [#allocation9], %s3572_s19, %s3572_s19, %s3573_s20  }
  0x4d   : > { %s3574_s9 = smov [#allocation10]   ;;  %s4144_s4 = sld [smem:[#allocation21_spill]] }
  0x4e   : > { %s231_s11 = sshll.u32 %s3574_s9, 4  ;;  %s232_s11 = int_to_ptr.vmem [resolvable:$true] %s231_s11 }
  0x53   : > { %s3400_s14 = scalar_lea.hbm %s4144_s4, 6144 }
  0x54   : > { %p3401_p6 = scmp.ne.s32.totalorder %s4144_s4, %s3400_s14  ;;  %p3407_p5 = scmp.lt.u32.totalorder %s3400_s14, %s4144_s4 }
  0x56   : > { %p3403_p10 = pnand %p3401_p6, %p3684_p13 }
  0x58   : > { %p3404_p3 = pneg %p3403_p10 }
  0x5a   : > { %p3409_p7 = pnand %p3407_p5, %p3404_p3 }
  0x5c   : > { %3412 = shalt.err (!%p3409_p7)
}
  0x5d   : > { %s3413_s10 = scalar_lea.vmem %s232_s11, 6144  ;;  %p3421_p2 = scmp.lt.s32.totalorder %s232_s11, %s232_s11 }
  0x5e   : > { %p3414_p9 = scmp.ne.s32.totalorder %s232_s11, %s3413_s10  ;;  %p3422_p1 = scmp.lt.s32.totalorder %s3413_s10, %s3413_s10 }
  0x60   : > { %p3416_p12 = pnand %p3414_p9, %p3684_p13  ;;  %p3423_p4 = por %p3422_p1, %p3421_p2 }
  0x62   : > { %p3417_p0 = pneg %p3416_p12 }
  0x64   : > { %p3424_p8 = pnand %p3423_p4, %p3417_p0 }
  0x66   : > { %3427 = shalt.err (!%p3424_p8)
}
  0x67   : > { %s4129_s19 = smov 128   ;;  %s4131_s16 = smov 8  }
  0x68   : > { %3253 = dma.hbm_to_vmem [thread:$0]  (!%p3670_p11), %s4144_s4, 6144, %s232_s11, [#allocation9], %s4129_s19, %s4129_s19, %s4131_s16  }
  0x69   : > { %s3750_s30 = sadd.s32 1, %s3566_s24   ;;  %s33_s12 = sadd.s32 1, %s3562_s23 }
  0x6a   : > { %s30_s9 = ssub.s32 %s3566_s24, %s3750_s30  ;;  %p40_p8 = scmp.ne.s32.totalorder %s3562_s23, %s3558_s22 }
  0x6b   : > { %p31_p4 = scmp.eq.s32.totalorder %s30_s9, 0  ;;  %p41_p13 = scmp.eq.s32.totalorder %s3566_s24, 0 }
  0x6c   : > { %p3268_p6 = scmp.lt.s32.totalorder %s3566_s24, 2  ;;  %p4146_p3 = scmp.eq.s32.totalorder %s3640_s25, 1 }
  0x6d   : > { %s3760_s13 = scalar_select %p31_p4, %s3562_s23, %s33_s12  }
  0x6e   : > { %p42_p10 = por %p41_p13, %p40_p8  ;;  %p3764_p5 = por %p4146_p3, %p40_p8 }
  0x6f   : > { %4145 = sst [smem:[#allocation17_spill]] %s3760_s13  ;;  %s248_s14 = sand.u32 1, %s3562_s23  }
  0x70   : > { %s2565_s15 = sshll.u32 %s3566_s24, 8  ;;  %s3770_s11 = sshll.u32 %s248_s14, 4 }
  0x71   : > { %s4148_s0 = sld [smem:[#allocation18_spill]]  ;;  %s252_s10 = scalar_lea.vmem [#allocation2], %s3770_s11 }
  0x72   : > { %s259_s20 = sshll.u32 %s252_s10, 4  ;;  %p3778_p11 = pnand %p3268_p6, %p42_p10  ;;  %s3782_s20 = int_to_ptr.vmem [resolvable:$true] %s259_s20 }
  0x73   : > { %s3787_s17 = scalar_lea.hbm %s4120_s1, %s2565_s15  ;;  %s3789_s18 = scalar_lea.sflag [#allocation3], %s248_s14 }
  0x74   : > { %p3430_p9 = pneg %p3778_p11 }
  0x77   : > { %s3775_s7 = scalar_lea.hbm %s4148_s0, %s2565_s15  ;;  %s3433_s2 = scalar_lea.hbm %s4148_s0, 512 }
  0x78   : > { %s3428_s19 = scalar_lea.hbm %s3775_s7, 256  ;;  %p3434_p2 = scmp.lt.u32.totalorder %s3775_s7, %s4148_s0 }
  0x79   : > { %p3429_p7 = scmp.ne.s32.totalorder %s3775_s7, %s3428_s19  ;;  %p3435_p1 = scmp.lt.u32.totalorder %s3433_s2, %s3428_s19 }
  0x7a   : > { %p3437_p8 = scmp.lt.u32.totalorder %s3428_s19, %s3775_s7 }
  0x7b   : > { %p3431_p12 = pnand %p3430_p9, %p3429_p7  ;;  %p3436_p4 = por %p3435_p1, %p3434_p2 }
  0x7d   : > { %p3432_p0 = pneg %p3431_p12  ;;  %p3438_p13 = por %p3437_p8, %p3436_p4 }
  0x7f   : > { %p3439_p6 = pnand %p3438_p13, %p3432_p0 }
  0x81   : > { %3442 = shalt.err (!%p3439_p6)
}
  0x82   : > { %s3443_s14 = scalar_lea.vmem %s3782_s20, 256  ;;  %s3577_s16 = smov [#allocation2]  }
  0x83   : > { %p3444_p10 = scmp.ne.s32.totalorder %s3782_s20, %s3443_s14  ;;  %s3448_s15 = sshll.u32 %s3577_s16, 4  ;;  %s3449_s15 = int_to_ptr.vmem [resolvable:$false] %s3448_s15 }
  0x84   : > { %s3450_s3 = scalar_lea.vmem %s3449_s15, 512  ;;  %p3451_p12 = scmp.lt.s32.totalorder %s3782_s20, %s3449_s15 }
  0x85   : > { %p3446_p3 = pnand %p3444_p10, %p3430_p9  ;;  %p3452_p2 = scmp.lt.s32.totalorder %s3450_s3, %s3443_s14 }
  0x87   : > { %p3447_p7 = pneg %p3446_p3  ;;  %p3453_p1 = por %p3452_p2, %p3451_p12 }
  0x89   : > { %p3454_p4 = pnand %p3453_p1, %p3447_p7 }
  0x8b   : > { %3457 = shalt.err (!%p3454_p4)
}
  0x8c   : > { %s4150_s2 = smov 8   ;;  %s4151_s4 = smov 128  }
  0x8d   : > { %3257 = dma.hbm_to_vmem [thread:$0]  (!%p3778_p11), %s3775_s7, 256, %s3782_s20, %s3789_s18, %s4151_s4, %s4151_s4, %s4150_s2  }
  0x8e   : > { %s273_s19 = scalar_lea.vmem [#allocation5], %s3770_s11  ;;  %s269_s12 = sand.u32 1, %s3566_s24  }
  0x8f   : > { %s280_s9 = sshll.u32 %s273_s19, 4  ;;  %s3824_s10 = scalar_lea.sflag [#allocation6], %s269_s12  ;;  %s3822_s9 = int_to_ptr.vmem [resolvable:$true] %s280_s9 }
  0x90   : > { %s3458_s14 = scalar_lea.hbm %s3787_s17, 256  ;;  %s3463_s3 = scalar_lea.hbm %s4120_s1, 512 }
  0x91   : > { %p3459_p0 = scmp.ne.s32.totalorder %s3787_s17, %s3458_s14  ;;  %p3464_p6 = scmp.lt.u32.totalorder %s3787_s17, %s4120_s1 }
  0x92   : > { %p3465_p10 = scmp.lt.u32.totalorder %s3463_s3, %s3458_s14  ;;  %p3467_p7 = scmp.lt.u32.totalorder %s3458_s14, %s3787_s17 }
  0x93   : > { %p3461_p8 = pnand %p3459_p0, %p3430_p9 }
  0x94   : > { %p3466_p3 = por %p3465_p10, %p3464_p6 }
  0x95   : > { %p3462_p13 = pneg %p3461_p8 }
  0x96   : > { %p3468_p12 = por %p3467_p7, %p3466_p3 }
  0x98   : > { %p3469_p2 = pnand %p3468_p12, %p3462_p13 }
  0x9a   : > { %3472 = shalt.err (!%p3469_p2)
}
  0x9b   : > { %s3473_s11 = scalar_lea.vmem %s3822_s9, 256  ;;  %s3578_s7 = smov [#allocation5]  }
  0x9c   : > { %p3474_p1 = scmp.ne.s32.totalorder %s3822_s9, %s3473_s11  ;;  %s3478_s20 = sshll.u32 %s3578_s7, 4  ;;  %s3479_s20 = int_to_ptr.vmem [resolvable:$false] %s3478_s20 }
  0x9d   : > { %s3480_s0 = scalar_lea.vmem %s3479_s20, 512  ;;  %p3481_p8 = scmp.lt.s32.totalorder %s3822_s9, %s3479_s20 }
  0x9e   : > { %p3476_p4 = pnand %p3474_p1, %p3430_p9  ;;  %p3482_p6 = scmp.lt.s32.totalorder %s3480_s0, %s3473_s11 }
  0xa0   : > { %p3477_p0 = pneg %p3476_p4  ;;  %p3483_p10 = por %p3482_p6, %p3481_p8 }
  0xa2   : > { %p3484_p3 = pnand %p3483_p10, %p3477_p0 }
  0xa4   : > { %3487 = shalt.err (!%p3484_p3)
}
  0xa5   : > { %3260 = dma.hbm_to_vmem [thread:$0]  (!%p3778_p11), %s3787_s17, 256, %s3822_s9, %s3824_s10, %s4151_s4, %s4151_s4, %s4150_s2  }
  0xa6   : > { %p4152_p9 = scmp.ne.s32.totalorder %s4139_s29, 0 }
  0xa7   : > { %s3856_s13 = sand.u32 (!%p4152_p9), 1, %s3558_s22   ;;  %p4153_p13 = scmp.ne.s32.totalorder (!%p4152_p9), %s4137_s27, 0 }
  0xa8   : > { %292 = sbr.rel (%p4152_p9) target bundleno = 2066 (0x812), region = 44  ;;  %s3859_s18 = sshll.u32 (!%p4152_p9), %s3856_s13, 4 }
  0xa9   : > { %s295_s26 = scalar_lea.sflag (!%p4152_p9), [#allocation3], %s3856_s13  ;;  %s298_s19 = scalar_lea.vmem (!%p4152_p9), [#allocation2], %s3859_s18 }
  0xaf   : > { %3533 = dma.done.wait (%p4153_p13), %s295_s26, 256  }
  0xb0   : > { %3535 = vsyncadd (%p4153_p13), %s295_s26, 4294967040  ;;  %s303_s29 = sand.u32 1, %s3640_s25   ;;  %s307_s2 = scalar_lea.vmem [#allocation5], %s3859_s18 }
  0xb1   : > { %s304_s17 = scalar_lea.sflag [#allocation6], %s303_s29 }
  0xb2   : > { %3537 = dma.done.wait (%p4153_p13), %s304_s17, 256  }
  0xb3   : > { %3539 = vsyncadd (%p4153_p13), %s304_s17, 4294967040  ;;  %p4154_p11 = scmp.eq.s32.totalorder %s3640_s25, 0 }
  0xb5   : > { %3541 = dma.done.wait (%p4154_p11), [#allocation6], 9216   ;;  %p4155_p7 = pmov %p4154_p11 }
  0xb7   : > { %3543 = vsyncadd (%p4155_p7), [#allocation6], 4294958080  ;;  %p4156_p12 = pmov %p4155_p7 }
  0xb8   : > { %p4157_p2 = pmov %p4155_p7 }
  0xb9   : > { %3545 = dma.done.wait (%p4156_p12), [#allocation9], 18432  }
  0xba   : > { %3547 = vsyncadd (%p4157_p2), [#allocation9], 4294948864  ;;  %v3579_v0 = vmov 0.0   ;;  %v376_v1 = vld [vmem:[#allocation7 + $0x10] sm:$0xff]  ;;  %v379_v2 = vld [vmem:[#allocation7 + $0x28] sm:$0xff]  ;;  %vm398_vm0 = vcmask 523264  }
  0xbb   : > { %469 = vmatprep.mubr.f32.mxu0 %v3579_v0  ;;  %v382_v3 = vld [vmem:[#allocation7 + $0x40] sm:$0xff]  ;;  %v2874_v4 = vpack.c.bf16 %v379_v2, %v376_v1  ;;  %v385_v5 = vld [vmem:[#allocation7 + $0x58] sm:$0xff]  ;;  %v388_v7 = vld [vmem:[#allocation7 + $0x70] sm:$0xff]  ;;  %vm759_vm1 = vcmask 130048   ;;  %s3580_s3 = smov 0.0  }
  0xbc   : > { %v2878_v6 = vpack.c.bf16 %v385_v5, %v382_v3  ;;  %v391_v8 = vld [vmem:[#allocation7 + $0x88] sm:$0xff]  ;;  %v3884_v9 = vld [vmem:[%s298_s19] sm:$0xff]  ;;  %v397_v13 = vld [vmem:[#allocation7 + $0xb8] sm:$0xff] }
  0xbd   : > { %2875 = vmatprep.subr.bf16.mxu1 %v2874_v4  ;;  %2684 = vmatprep.mubr.msk.f32.mxu1 %vm398_vm0, %v3884_v9  ;;  %v375_v10 = vld [vmem:[#allocation7 + $0x8] sm:$0xff]  ;;  %v2882_v11 = vpack.c.bf16 %v391_v8, %v388_v7  ;;  %v394_v12 = vld [vmem:[#allocation7 + $0xa0] sm:$0xff]  ;;  %v377_v17 = vld [vmem:[#allocation7 + $0x18] sm:$0xff] }
  0xbe   : > { %2877 = vmatpush3.bf16.msra.mxu1 %v2874_v4  ;;  %v378_v14 = vld [vmem:[#allocation7 + $0x20] sm:$0xff]  ;;  %v381_v18 = vld [vmem:[#allocation7 + $0x38] sm:$0xff]  ;;  %v384_v20 = vld [vmem:[#allocation7 + $0x50] sm:$0xff]  ;;  %v2886_v25 = vpack.c.bf16 %v397_v13, %v394_v12  ;;  %v359_v13 = vlaneseq }
  0xbf   : > { %2879 = vmatprep.subr.bf16.mxu1 %v2878_v6  ;;  %v2858_v15 = vpack.c.bf16 %v378_v14, %v375_v10  ;;  %v374_v16 = vld [vmem:[#allocation7] sm:$0xff]  ;;  %v2862_v21 = vpack.c.bf16 %v384_v20, %v381_v18  ;;  %v380_v22 = vld [vmem:[#allocation7 + $0x30] sm:$0xff]  ;;  %v383_v23 = vld [vmem:[#allocation7 + $0x48] sm:$0xff] }
  0xc0   : > { %v2860_v19 = vpack.c.bf16 %v377_v17, %v374_v16  ;;  %v387_v24 = vld [vmem:[#allocation7 + $0x68] sm:$0xff]  ;;  %v585_v26 = vld [vmem:[#allocation7 + $0x190] sm:$0xff]  ;;  %v2864_v27 = vpack.c.bf16 %v383_v23, %v380_v22  ;;  %v390_v28 = vld [vmem:[#allocation7 + $0x80] sm:$0xff]  ;;  %v363_v14 = vand.u32 127, %v359_v13 }
  0xc1   : > { %2859 = vmatprep.subr.bf16.mxu0 %v2858_v15  ;;  %v588_v29 = vld [vmem:[#allocation7 + $0x1a8] sm:$0xff]  ;;  %v2866_v30 = vpack.c.bf16 %v390_v28, %v387_v24  ;;  %v386_v31 = vld [vmem:[#allocation7 + $0x60] sm:$0xff]  ;;  %v389_v32 = vld [vmem:[#allocation7 + $0x78] sm:$0xff]  ;;  %v3910_v15 = vshrl.u32 %v359_v13, 7 }
  0xc2   : > { %2881 = vmatpush3.bf16.msra.mxu1 %v2878_v6  ;;  %2861 = vmatpush1.bf16.msra.mxu0 %v2860_v19  ;;  %v393_v33 = vld [vmem:[#allocation7 + $0x98] sm:$0xff]  ;;  %v396_v34 = vld [vmem:[#allocation7 + $0xb0] sm:$0xff]  ;;  %v2906_v35 = vpack.c.bf16 %v588_v29, %v585_v26  ;;  %v591_v36 = vld [vmem:[#allocation7 + $0x1c0] sm:$0xff]  ;;  %v2868_v37 = vpack.c.bf16 %v389_v32, %v386_v31  ;;  %v364_v16 = vadd.s32 1, %v363_v14 }
  0xc3   : > { %2883 = vmatprep.subr.bf16.mxu1 %v2882_v11  ;;  %2863 = vmatprep.subr.bf16.mxu0 %v2862_v21  ;;  %v594_v38 = vld [vmem:[#allocation7 + $0x1d8] sm:$0xff]  ;;  %v2870_v39 = vpack.c.bf16 %v396_v34, %v393_v33  ;;  %v392_v40 = vld [vmem:[#allocation7 + $0x90] sm:$0xff]  ;;  %v395_v41 = vld [vmem:[#allocation7 + $0xa8] sm:$0xff]  ;;  %v3919_v18 = vadd.s32 8, %v3910_v15 }
  0xc4   : > { %v584_v42 = vld [vmem:[#allocation7 + $0x188] sm:$0xff]  ;;  %v587_v43 = vld [vmem:[#allocation7 + $0x1a0] sm:$0xff]  ;;  %v2910_v45 = vpack.c.bf16 %v594_v38, %v591_v36  ;;  %v2872_v46 = vpack.c.bf16 %v395_v41, %v392_v40  ;;  %v597_v47 = vld [vmem:[#allocation7 + $0x1f0] sm:$0xff]  ;;  %vm365_vm2 = vcmp.eq.s32.totalorder %v3910_v15, %v364_v16 }
  0xc5   : > { %v3890_v44 = vld [vmem:[%s298_s19 + $0x8] sm:$0xff]  ;;  %v2890_v49 = vpack.c.bf16 %v587_v43, %v584_v42  ;;  %v583_v50 = vld [vmem:[#allocation7 + $0x180] sm:$0xff]  ;;  %v593_v53 = vld [vmem:[#allocation7 + $0x1d0] sm:$0xff]  ;;  %v3914_v17 = vsel %vm365_vm2, 1.0, %v3579_v0  ;;  %vm366_vm3 = vcmp.eq.s32.totalorder %v3919_v18, %v364_v16 }
  0xc6   : > { %2885 = vmatpush3.bf16.msra.mxu1 %v2882_v11  ;;  %2865 = vmatpush1.bf16.msra.mxu0 %v2864_v27  ;;  %v600_v48 = vld [vmem:[#allocation7 + $0x208] sm:$0xff]  ;;  %v586_v51 = vld [vmem:[#allocation7 + $0x198] sm:$0xff]  ;;  %v603_v55 = vld [vmem:[#allocation7 + $0x220] sm:$0xff]  ;;  %v3923_v27 = vsel %vm366_vm3, 1.0, %v3579_v0 }
  0xc7   : > { %2887 = vmatprep.subr.bf16.mxu1 %v2886_v25  ;;  %2867 = vmatprep.subr.bf16.mxu0 %v2866_v30  ;;  %v590_v52 = vld [vmem:[#allocation7 + $0x1b8] sm:$0xff]  ;;  %v2914_v54 = vpack.c.bf16 %v600_v48, %v597_v47  ;;  %v2892_v57 = vpack.c.bf16 %v586_v51, %v583_v50  ;;  %v589_v59 = vld [vmem:[#allocation7 + $0x1b0] sm:$0xff]  ;;  %v592_v60 = vld [vmem:[#allocation7 + $0x1c8] sm:$0xff]  ;;  %v2526_v50 = vadd.s32 4294967295, %v363_v14 }
  0xc8   : > { %v606_v56 = vld [vmem:[#allocation7 + $0x238] sm:$0xff]  ;;  %v2894_v58 = vpack.c.bf16 %v593_v53, %v590_v52  ;;  %v596_v61 = vld [vmem:[#allocation7 + $0x1e8] sm:$0xff]  ;;  %v599_v62 = vld [vmem:[#allocation7 + $0x200] sm:$0xff]  ;;  %v2896_v1 = vpack.c.bf16 %v592_v60, %v589_v59 }
  0xc9   : > { %v2918_v63 = vpack.c.bf16 %v606_v56, %v603_v55  ;;  %v2898_v2 = vpack.c.bf16 %v599_v62, %v596_v61  ;;  %v595_v3 = vld [vmem:[#allocation7 + $0x1e0] sm:$0xff]  ;;  %v598_v4 = vld [vmem:[#allocation7 + $0x1f8] sm:$0xff]  ;;  %v605_v6 = vld [vmem:[#allocation7 + $0x230] sm:$0xff]  ;;  %vm370_vm4 = vcmp.eq.s32.totalorder %v3910_v15, %v2526_v50  ;;  %vm371_vm5 = vcmp.eq.s32.totalorder %v3919_v18, %v2526_v50 }
  0xca   : > { %2889 = vmatpush3.bf16.msra.mxu1 %v2886_v25  ;;  %2869 = vmatpush1.bf16.msra.mxu0 %v2868_v37  ;;  %v602_v5 = vld [vmem:[#allocation7 + $0x218] sm:$0xff]  ;;  %v2900_v7 = vpack.c.bf16 %v598_v4, %v595_v3  ;;  %v601_v10 = vld [vmem:[#allocation7 + $0x210] sm:$0xff]  ;;  %v604_v11 = vld [vmem:[#allocation7 + $0x228] sm:$0xff]  ;;  %v3936_v4 = vsel %vm370_vm4, 1.0, %v3579_v0 }
  0xcb   : > { %2907 = vmatprep.subr.bf16.mxu1 %v2906_v35  ;;  %2871 = vmatprep.subr.bf16.mxu0 %v2870_v39  ;;  %v2902_v8 = vpack.c.bf16 %v605_v6, %v602_v5  ;;  %v2904_v12 = vpack.c.bf16 %v604_v11, %v601_v10  ;;  %v560_v19 = vld [vmem:[#allocation7 + $0xd0] sm:$0xff]  ;;  %v563_v20 = vld [vmem:[#allocation7 + $0xe8] sm:$0xff]  ;;  %v566_v25 = vld [vmem:[#allocation7 + $0x100] sm:$0xff] }
  0xcc   : > { %v2946_v24 = vpack.c.bf16 %v563_v20, %v560_v19  ;;  %v569_v26 = vld [vmem:[#allocation7 + $0x118] sm:$0xff]  ;;  %v572_v31 = vld [vmem:[#allocation7 + $0x130] sm:$0xff]  ;;  %v575_v32 = vld [vmem:[#allocation7 + $0x148] sm:$0xff] }
  0xcd   : > { %2685 = vmatmul.mubr.msk.f32.vlgmr.msra.gmra.mrb[0].mxu1 %vm398_vm0, %v3890_v44  ;;  %v2950_v29 = vpack.c.bf16 %v569_v26, %v566_v25  ;;  %v559_v33 = vld [vmem:[#allocation7 + $0xc8] sm:$0xff]  ;;  %v562_v34 = vld [vmem:[#allocation7 + $0xe0] sm:$0xff]  ;;  %v2954_v36 = vpack.c.bf16 %v575_v32, %v572_v31  ;;  %v581_v40 = vld [vmem:[#allocation7 + $0x178] sm:$0xff]  ;;  %v3945_v25 = vsel %vm371_vm5, 1.0, %v3579_v0 }
  0xce   : > { %2909 = vmatpush3.bf16.msra.mxu1 %v2906_v35  ;;  %2703 = vmatprep.mubr.msk.f32.mxu1 %vm398_vm0, %v3884_v9  ;;  %v578_v37 = vld [vmem:[#allocation7 + $0x160] sm:$0xff]  ;;  %v2930_v42 = vpack.c.bf16 %v562_v34, %v559_v33  ;;  %v568_v47 = vld [vmem:[#allocation7 + $0x110] sm:$0xff]  ;;  %v567_v53 = vld [vmem:[#allocation7 + $0x108] sm:$0xff] }
  0xcf   : > { %2911 = vmatprep.subr.bf16.mxu1 %v2910_v45  ;;  %2873 = vmatpush1.bf16.msra.mxu0 %v2872_v46  ;;  %v558_v43 = vld [vmem:[#allocation7 + $0xc0] sm:$0xff]  ;;  %v565_v46 = vld [vmem:[#allocation7 + $0xf8] sm:$0xff]  ;;  %v2958_v48 = vpack.c.bf16 %v581_v40, %v578_v37  ;;  %v564_v52 = vld [vmem:[#allocation7 + $0xf0] sm:$0xff] }
  0xd0   : > { %2891 = vmatprep.subr.bf16.mxu0 %v2890_v49  ;;  %v2934_v51 = vpack.c.bf16 %v568_v47, %v565_v46  ;;  %v571_v55 = vld [vmem:[#allocation7 + $0x128] sm:$0xff]  ;;  %v574_v56 = vld [vmem:[#allocation7 + $0x140] sm:$0xff]  ;;  %v2936_v60 = vpack.c.bf16 %v567_v53, %v564_v52  ;;  %v1237_v61 = vld [vmem:[#allocation8 + $0x18] sm:$0xff] }
  0xd1   : > { %v1235_v59 = vld [vmem:[#allocation8 + $0x8] sm:$0xff]  ;;  %v2938_v62 = vpack.c.bf16 %v574_v56, %v571_v55  ;;  %v580_v3 = vld [vmem:[#allocation7 + $0x170] sm:$0xff]  ;;  %v1234_v13 = vld [vmem:[#allocation8] sm:$0xff] }
  0xd2   : > { %2913 = vmatpush3.bf16.msra.mxu1 %v2910_v45  ;;  %2527 = vmatmul.mubr.msk.f32.vlgmr.msra.gmra.mrb[0].mxu0 %vm398_vm0, %v3884_v9  ;;  %v561_v45 = vld [vmem:[#allocation7 + $0xd8] sm:$0xff]  ;;  %v2970_v5 = vpack.c.bf16 %v1237_v61, %v1235_v59  ;;  %v576_v11 = vld [vmem:[#allocation7 + $0x150] sm:$0xff]  ;;  %v1239_v20 = vld [vmem:[#allocation8 + $0x28] sm:$0xff] }
  0xd3   : > { %2915 = vmatprep.subr.bf16.mxu1 %v2914_v54  ;;  %475 = vmatprep.mubr.f32.mxu0 %v3579_v0  ;;  %v2932_v49 = vpack.c.bf16 %v561_v45, %v558_v43  ;;  %v1236_v14 = vld [vmem:[#allocation8 + $0x10] sm:$0xff]  ;;  %v1238_v31 = vld [vmem:[#allocation8 + $0x20] sm:$0xff]  ;;  %v1243_v32 = vld [vmem:[#allocation8 + $0x48] sm:$0xff] }
  0xd4   : > { %2893 = vmatpush1.bf16.msra.mxu0 %v2892_v57  ;;  %v2972_v26 = vpack.c.bf16 %v1236_v14, %v1234_v13  ;;  %v1240_v18 = vld [vmem:[#allocation8 + $0x30] sm:$0xff]  ;;  %v1245_v33 = vld [vmem:[#allocation8 + $0x58] sm:$0xff]  ;;  %v1242_v37 = vld [vmem:[#allocation8 + $0x40] sm:$0xff] }
  0xd5   : > { %2895 = vmatprep.subr.bf16.mxu0 %v2894_v58  ;;  %v1249_v40 = vld [vmem:[#allocation8 + $0x78] sm:$0xff]  ;;  %v1382_v43 = vld [vmem:[#allocation8 + $0x228] sm:$0xff]  ;;  %v1246_v47 = vld [vmem:[#allocation8 + $0x60] sm:$0xff] }
  0xd6   : > { %2917 = vmatpush3.bf16.msra.mxu1 %v2914_v54  ;;  %2528 = vmatmul.mubr.msk.f32.gmra.mrb[2].mxu0 %vm398_vm0, %v3890_v44  ;;  %v1384_v45 = vld [vmem:[#allocation8 + $0x238] sm:$0xff]  ;;  %v1381_v53 = vld [vmem:[#allocation8 + $0x220] sm:$0xff]  ;;  %v1386_v55 = vld [vmem:[#allocation8 + $0x248] sm:$0xff] }
  0xd7   : > { %2919 = vmatprep.subr.bf16.mxu1 %v2918_v63  ;;  %671 = vmatprep.mubr.f32.mxu0 %v3579_v0  ;;  %v3006_v52 = vpack.c.bf16 %v1384_v45, %v1382_v43  ;;  %v1388_v56 = vld [vmem:[#allocation8 + $0x258] sm:$0xff]  ;;  %v1252_v59 = vld [vmem:[#allocation8 + $0x90] sm:$0xff]  ;;  %v1402_v43 = vld [vmem:[#allocation8 + $0x2c8] sm:$0xff] }
  0xd8   : > { %2897 = vmatpush1.bf16.msra.mxu0 %v2896_v1  ;;  %v573_v1 = vld [vmem:[#allocation7 + $0x138] sm:$0xff] }
  0xd9   : > { %2899 = vmatprep.subr.bf16.mxu0 %v2898_v2  ;;  %v577_v2 = vld [vmem:[#allocation7 + $0x158] sm:$0xff] }
  0xda   : > { %2921 = vmatpush3.bf16.msra.mxu1 %v2918_v63  ;;  %v570_v63 = vld [vmem:[#allocation7 + $0x120] sm:$0xff]  ;;  %v1261_v13 = vld [vmem:[#allocation8 + $0xd8] sm:$0xff] }
  0xdb   : > { %v2940_v6 = vpack.c.bf16 %v573_v1, %v570_v63  ;;  %v3010_v63 = vpack.c.bf16 %v1388_v56, %v1386_v55  ;;  %v1385_v1 = vld [vmem:[#allocation8 + $0x240] sm:$0xff]  ;;  %v1404_v45 = vld [vmem:[#allocation8 + $0x2d8] sm:$0xff]  ;;  %v1407_v56 = vld [vmem:[#allocation8 + $0x2f0] sm:$0xff] }
  0xdc   : > { %2901 = vmatpush1.bf16.msra.mxu0 %v2900_v7  ;;  %v1405_v55 = vld [vmem:[#allocation8 + $0x2e0] sm:$0xff] }
  0xdd   : > { %2704 = vmatmul.mubr.msk.f32.vlgmr.msra.gmra.mrb[2].mxu1 %vm398_vm0, %v3890_v44  ;;  %2903 = vmatprep.subr.bf16.mxu0 %v2902_v8  ;;  %v2942_v8 = vpack.c.bf16 %v580_v3, %v577_v2  ;;  %v1387_v2 = vld [vmem:[#allocation8 + $0x250] sm:$0xff]  ;;  %v1390_v3 = vld [vmem:[#allocation8 + $0x268] sm:$0xff] }
  0xde   : > { %830 = vmatprep.mubr.f32.mxu1 %v3579_v0 }
  0xe0   : > { %2905 = vmatpush1.bf16.msra.mxu0 %v2904_v12  ;;  %v579_v12 = vld [vmem:[#allocation7 + $0x168] sm:$0xff] }
  0xe1   : > { %v2944_v16 = vpack.c.bf16 %v579_v12, %v576_v11  ;;  %v1259_v11 = vld [vmem:[#allocation8 + $0xc8] sm:$0xff]  ;;  %v3012_v12 = vpack.c.bf16 %v1387_v2, %v1385_v1 }
  0xe3   : > { %2531 = vmatmul.mubr.msk.f32.vlgmr.msra.gmra.mrb[4].mxu0 %vm398_vm0, %v3884_v9 }
  0xe4   : > { %677 = vmatprep.mubr.f32.mxu0 %v3579_v0 }
  0xe7   : > { %2532 = vmatmul.mubr.msk.f32.gmra.mrb[6].mxu0 %vm398_vm0, %v3890_v44 }
  0xe8   : > { %2710 = vmatprep.mubr.msk.f32.mxu0 %vm759_vm1, %v3914_v17 }
 0x1a0   : > { %v2686_v21 = vpop.f32.mrb[0].mxu1 }
 0x1a1   : > { %v548_v22 = vpop.f32.mrb[1].mxu1 }
 0x1a2   : > { %v2926_v23 = vpack.c.bf16 %v2686_v21, %v548_v22  ;;  %v1241_v21 = vld [vmem:[#allocation8 + $0x38] sm:$0xff] }
 0x1a4   : > { %2927 = vmatprep.subr.bf16.mxu0 %v2926_v23 }
 0x1a5   : > { %2929 = vmatpush3.bf16.msra.mxu0 %v2926_v23  ;;  %v471_v28 = vpop.f32.mrb[0].mxu0 }
 0x1a6   : > { %2947 = vmatprep.subr.bf16.mxu0 %v2946_v24  ;;  %v473_v30 = vpop.f32.mrb[1].mxu0 }
 0x1a8   : > { %2711 = vmatmul.mubr.msk.f32.vlgmr.msra.gmra.mrb[8].mxu0 %vm759_vm1, %v3923_v27 }
 0x1a9   : > { %2949 = vmatpush3.bf16.msra.mxu0 %v2946_v24  ;;  %2729 = vmatprep.mubr.msk.f32.mxu0 %vm398_vm0, %v3884_v9  ;;  %v477_v35 = vpop.f32.mrb[2].mxu0 }
 0x1aa   : > { %2951 = vmatprep.subr.bf16.mxu0 %v2950_v29  ;;  %v2924_v38 = vpack.c.bf16 %v477_v35, %v471_v28  ;;  %v479_v39 = vpop.f32.mrb[3].mxu0  ;;  %v1378_v28 = vld [vmem:[#allocation8 + $0x208] sm:$0xff]  ;;  %v2976_v35 = vpack.c.bf16 %v1240_v18, %v1238_v31  ;;  %v1393_v18 = vld [vmem:[#allocation8 + $0x280] sm:$0xff] }
 0x1ab   : > { %v2922_v41 = vpack.c.bf16 %v479_v39, %v473_v30  ;;  %v2974_v30 = vpack.c.bf16 %v1241_v21, %v1239_v20  ;;  %v1247_v39 = vld [vmem:[#allocation8 + $0x68] sm:$0xff]  ;;  %v1396_v21 = vld [vmem:[#allocation8 + $0x298] sm:$0xff] }
 0x1ac   : > { %v1394_v20 = vld [vmem:[#allocation8 + $0x288] sm:$0xff] }
 0x1ad   : > { %2953 = vmatpush3.bf16.msra.mxu0 %v2950_v29  ;;  %2923 = vmatprep.subr.bf16.mxu1 %v2922_v41  ;;  %v1380_v29 = vld [vmem:[#allocation8 + $0x218] sm:$0xff]  ;;  %v1377_v41 = vld [vmem:[#allocation8 + $0x200] sm:$0xff]  ;;  %v3018_v31 = vpack.c.bf16 %v1396_v21, %v1394_v20 }
 0x1ae   : > { %2955 = vmatprep.subr.bf16.mxu0 %v2954_v36  ;;  %2925 = vmatpush1.bf16.msra.mxu1 %v2924_v38  ;;  %v3002_v34 = vpack.c.bf16 %v1380_v29, %v1378_v28  ;;  %v1244_v38 = vld [vmem:[#allocation8 + $0x50] sm:$0xff]  ;;  %v1263_v28 = vld [vmem:[#allocation8 + $0xe8] sm:$0xff]  ;;  %v1355_v20 = vld [vmem:[#allocation8 + $0x158] sm:$0xff] }
 0x1af   : > { %2931 = vmatprep.subr.bf16.mxu1 %v2930_v42  ;;  %v1379_v42 = vld [vmem:[#allocation8 + $0x210] sm:$0xff]  ;;  %v2980_v46 = vpack.c.bf16 %v1244_v38, %v1242_v37  ;;  %v1262_v37 = vld [vmem:[#allocation8 + $0xe0] sm:$0xff] }
 0x1b0   : > { %v2705_v54 = vpop.f32.mrb[2].mxu1  ;;  %v3004_v50 = vpack.c.bf16 %v1379_v42, %v1377_v41  ;;  %v1264_v38 = vld [vmem:[#allocation8 + $0xf0] sm:$0xff]  ;;  %v1397_v41 = vld [vmem:[#allocation8 + $0x2a0] sm:$0xff] }
 0x1b1   : > { %2957 = vmatpush3.bf16.msra.mxu0 %v2954_v36  ;;  %v750_v57 = vpop.f32.mrb[3].mxu1  ;;  %2535 = vmatmul.mubr.msk.f32.vlgmr.msra.gmra.mrb[4].mxu1 %vm759_vm1, %v3914_v17  ;;  %v2978_v36 = vpack.c.bf16 %v1245_v33, %v1243_v32  ;;  %v1395_v32 = vld [vmem:[#allocation8 + $0x290] sm:$0xff]  ;;  %v1398_v33 = vld [vmem:[#allocation8 + $0x2a8] sm:$0xff] }
 0x1b2   : > { %2959 = vmatprep.subr.bf16.mxu0 %v2958_v48  ;;  %v2966_v58 = vpack.c.bf16 %v2705_v54, %v750_v57  ;;  %2933 = vmatpush1.bf16.msra.mxu1 %v2932_v49  ;;  %v1251_v49 = vld [vmem:[#allocation8 + $0x88] sm:$0xff]  ;;  %v1383_v54 = vld [vmem:[#allocation8 + $0x230] sm:$0xff] }
 0x1b3   : > { %2935 = vmatprep.subr.bf16.mxu1 %v2934_v51  ;;  %836 = vmatprep.mubr.f32.mxu1 %v3579_v0  ;;  %v1253_v51 = vld [vmem:[#allocation8 + $0x98] sm:$0xff]  ;;  %v3008_v61 = vpack.c.bf16 %v1383_v54, %v1381_v53  ;;  %v1399_v42 = vld [vmem:[#allocation8 + $0x2b0] sm:$0xff] }
 0x1b5   : > { %2961 = vmatpush3.bf16.msra.mxu0 %v2958_v48  ;;  %2536 = vmatmul.mubr.msk.f32.gmra.mrb[6].mxu1 %vm759_vm1, %v3923_v27  ;;  %v1248_v48 = vld [vmem:[#allocation8 + $0x70] sm:$0xff] }
 0x1b6   : > { %2967 = vmatprep.subr.bf16.mxu0 %v2966_v58  ;;  %2937 = vmatpush1.bf16.msra.mxu1 %v2936_v60  ;;  %v673_v7 = vpop.f32.mrb[4].mxu0  ;;  %v2984_v57 = vpack.c.bf16 %v1248_v48, %v1246_v47  ;;  %v1255_v60 = vld [vmem:[#allocation8 + $0xa8] sm:$0xff]  ;;  %v3026_v47 = vpack.c.bf16 %v1404_v45, %v1402_v43  ;;  %v1401_v48 = vld [vmem:[#allocation8 + $0x2c0] sm:$0xff]  ;;  %v1367_v43 = vld [vmem:[#allocation8 + $0x1b8] sm:$0xff] }
 0x1b7   : > { %2939 = vmatprep.subr.bf16.mxu1 %v2938_v62  ;;  %v675_v10 = vpop.f32.mrb[5].mxu0  ;;  %982 = vmatprep.mubr.f32.mxu1 %v3579_v0  ;;  %v1257_v62 = vld [vmem:[#allocation8 + $0xb8] sm:$0xff] }
 0x1b8   : > { %2730 = vmatmul.mubr.msk.f32.vlgmr.msra.gmra.mrb[8].mxu0 %vm398_vm0, %v3890_v44 }
 0x1b9   : > { %2969 = vmatpush3.bf16.msra.mxu0 %v2966_v58  ;;  %2736 = vmatprep.mubr.msk.f32.mxu0 %vm759_vm1, %v3936_v4  ;;  %v1250_v58 = vld [vmem:[#allocation8 + $0x80] sm:$0xff] }
 0x1ba   : > { %2971 = vmatprep.subr.bf16.mxu0 %v2970_v5  ;;  %2941 = vmatpush1.bf16.msra.mxu1 %v2940_v6  ;;  %v679_v19 = vpop.f32.mrb[6].mxu0  ;;  %v1392_v5 = vld [vmem:[#allocation8 + $0x278] sm:$0xff]  ;;  %v2988_v6 = vpack.c.bf16 %v1252_v59, %v1250_v58 }
 0x1bb   : > { %2943 = vmatprep.subr.bf16.mxu1 %v2942_v8  ;;  %v2964_v22 = vpack.c.bf16 %v679_v19, %v673_v7  ;;  %v681_v23 = vpop.f32.mrb[7].mxu0  ;;  %v2990_v7 = vpack.c.bf16 %v1257_v62, %v1255_v60  ;;  %v1254_v8 = vld [vmem:[#allocation8 + $0xa0] sm:$0xff]  ;;  %v3014_v14 = vpack.c.bf16 %v1392_v5, %v1390_v3  ;;  %v1391_v19 = vld [vmem:[#allocation8 + $0x270] sm:$0xff]  ;;  %v1345_v60 = vld [vmem:[#allocation8 + $0x108] sm:$0xff] }
 0x1bc   : > { %v2962_v24 = vpack.c.bf16 %v681_v23, %v675_v10  ;;  %v1256_v10 = vld [vmem:[#allocation8 + $0xb0] sm:$0xff]  ;;  %v2994_v23 = vpack.c.bf16 %v1261_v13, %v1259_v11  ;;  %v1344_v5 = vld [vmem:[#allocation8 + $0x100] sm:$0xff] }
 0x1bd   : > { %v1348_v13 = vld [vmem:[#allocation8 + $0x120] sm:$0xff] }
 0x1be   : > { %2945 = vmatpush1.bf16.msra.mxu1 %v2944_v16  ;;  %v1389_v16 = vld [vmem:[#allocation8 + $0x260] sm:$0xff] }
 0x1bf   : > { %2963 = vmatprep.subr.bf16.mxu1 %v2962_v24  ;;  %v1258_v24 = vld [vmem:[#allocation8 + $0xc0] sm:$0xff]  ;;  %v3016_v29 = vpack.c.bf16 %v1391_v19, %v1389_v16  ;;  %v1353_v19 = vld [vmem:[#allocation8 + $0x148] sm:$0xff] }
 0x1c0   : > { %2737 = vmatmul.mubr.msk.f32.vlgmr.msra.gmra.mrb[8].mxu0 %vm759_vm1, %v3945_v25 }
 0x1c1   : > { %2973 = vmatpush1.bf16.msra.mxu0 %v2972_v26  ;;  %2539 = vmatmul.mubr.msk.f32.vlgmr.msra.gmra.mrb[4].mxu1 %vm398_vm0, %v3884_v9  ;;  %v2982_v9 = vpack.c.bf16 %v1249_v40, %v1247_v39  ;;  %v1260_v26 = vld [vmem:[#allocation8 + $0xd0] sm:$0xff]  ;;  %v3020_v39 = vpack.c.bf16 %v1395_v32, %v1393_v18 }
 0x1c2   : > { %2975 = vmatprep.subr.bf16.mxu0 %v2974_v30  ;;  %988 = vmatprep.mubr.f32.mxu1 %v3579_v0  ;;  %v1265_v30 = vld [vmem:[#allocation8 + $0xf8] sm:$0xff] }
 0x1c3   : > { %2965 = vmatpush1.bf16.msra.mxu1 %v2964_v22  ;;  %1330 = vmatprep.mubr.f32.mxu0 %v3579_v0  ;;  %v2992_v22 = vpack.c.bf16 %v1256_v10, %v1254_v8  ;;  %v1351_v8 = vld [vmem:[#allocation8 + $0x138] sm:$0xff] }
 0x1c4   : > { %3003 = vmatprep.subr.bf16.mxu1 %v3002_v34  ;;  %v1400_v34 = vld [vmem:[#allocation8 + $0x2b8] sm:$0xff] }
 0x1c5   : > { %2977 = vmatpush1.bf16.msra.mxu0 %v2976_v35  ;;  %2540 = vmatmul.mubr.msk.f32.gmra.mrb[6].mxu1 %vm398_vm0, %v3890_v44  ;;  %v2986_v44 = vpack.c.bf16 %v1253_v51, %v1251_v49  ;;  %v2996_v35 = vpack.c.bf16 %v1260_v26, %v1258_v24  ;;  %v3022_v40 = vpack.c.bf16 %v1400_v34, %v1398_v33  ;;  %v1403_v49 = vld [vmem:[#allocation8 + $0x2d0] sm:$0xff]  ;;  %v1408_v51 = vld [vmem:[#allocation8 + $0x2f8] sm:$0xff]  ;;  %v1352_v24 = vld [vmem:[#allocation8 + $0x140] sm:$0xff] }
 0x1c6   : > { %2979 = vmatprep.subr.bf16.mxu0 %v2978_v36  ;;  %1140 = vmatprep.mubr.f32.mxu1 %v3579_v0  ;;  %v2998_v36 = vpack.c.bf16 %v1265_v30, %v1263_v28  ;;  %v3028_v53 = vpack.c.bf16 %v1403_v49, %v1401_v48  ;;  %v1354_v26 = vld [vmem:[#allocation8 + $0x150] sm:$0xff]  ;;  %v1357_v30 = vld [vmem:[#allocation8 + $0x168] sm:$0xff]  ;;  %v1356_v34 = vld [vmem:[#allocation8 + $0x160] sm:$0xff] }
 0x1c7   : > { %v3048_v32 = vpack.c.bf16 %v1354_v26, %v1352_v24  ;;  %v1369_v48 = vld [vmem:[#allocation8 + $0x1c8] sm:$0xff]  ;;  %v1371_v49 = vld [vmem:[#allocation8 + $0x1d8] sm:$0xff] }
 0x1c9   : > { %2981 = vmatpush1.bf16.msra.mxu0 %v2980_v46  ;;  %2543 = vmatmul.mubr.msk.f32.vlgmr.msra.gmra.mrb[4].mxu1 %vm759_vm1, %v3936_v4  ;;  %v3000_v46 = vpack.c.bf16 %v1264_v38, %v1262_v37  ;;  %v1363_v37 = vld [vmem:[#allocation8 + $0x198] sm:$0xff] }
 0x1ca   : > { %2983 = vmatprep.subr.bf16.mxu0 %v2982_v9  ;;  %3005 = vmatpush1.bf16.msra.mxu1 %v3004_v50  ;;  %v3024_v9 = vpack.c.bf16 %v1399_v42, %v1397_v41  ;;  %v1406_v50 = vld [vmem:[#allocation8 + $0x2e8] sm:$0xff]  ;;  %v1362_v41 = vld [vmem:[#allocation8 + $0x190] sm:$0xff] }
 0x1cb   : > { %3007 = vmatprep.subr.bf16.mxu1 %v3006_v52  ;;  %1146 = vmatprep.mubr.f32.mxu1 %v3579_v0  ;;  %v3964_v52 = vld [vmem:[%s307_s2] sm:$0xff]  ;;  %v3030_v54 = vpack.c.bf16 %v1408_v51, %v1406_v50  ;;  %v1365_v42 = vld [vmem:[#allocation8 + $0x1a8] sm:$0xff]  ;;  %v3062_v51 = vpack.c.bf16 %v1371_v49, %v1369_v48  ;;  %v1981_v49 = vld [vmem:[#allocation10 + $0x118] sm:$0xff] }
 0x1cd   : > { %2985 = vmatpush1.bf16.msra.mxu0 %v2984_v57  ;;  %2544 = vmatmul.mubr.msk.f32.gmra.mrb[6].mxu1 %vm759_vm1, %v3945_v25  ;;  %v3970_v57 = vld [vmem:[%s307_s2 + $0x8] sm:$0xff] }
 0x1ce   : > { %2987 = vmatprep.subr.bf16.mxu0 %v2986_v44  ;;  %3009 = vmatpush1.bf16.msra.mxu1 %v3008_v61  ;;  %v3032_v44 = vpack.c.bf16 %v1407_v56, %v1405_v55  ;;  %v1347_v61 = vld [vmem:[#allocation8 + $0x118] sm:$0xff]  ;;  %v1373_v55 = vld [vmem:[#allocation8 + $0x1e8] sm:$0xff] }
 0x1cf   : > { %3011 = vmatprep.subr.bf16.mxu1 %v3010_v63  ;;  %1473 = vmatprep.mubr.f32.mxu1 %v3579_v0  ;;  %v3038_v3 = vpack.c.bf16 %v1347_v61, %v1345_v60  ;;  %v1375_v56 = vld [vmem:[#allocation8 + $0x1f8] sm:$0xff]  ;;  %v1374_v60 = vld [vmem:[#allocation8 + $0x1f0] sm:$0xff] }
 0x1d1   : > { %2989 = vmatpush1.bf16.msra.mxu0 %v2988_v6  ;;  %v1346_v6 = vld [vmem:[#allocation8 + $0x110] sm:$0xff] }
 0x1d2   : > { %2991 = vmatprep.subr.bf16.mxu0 %v2990_v7  ;;  %3013 = vmatpush1.bf16.msra.mxu1 %v3012_v12  ;;  %v1349_v7 = vld [vmem:[#allocation8 + $0x128] sm:$0xff]  ;;  %v3040_v10 = vpack.c.bf16 %v1346_v6, %v1344_v5 }
 0x1d3   : > { %3015 = vmatprep.subr.bf16.mxu1 %v3014_v14  ;;  %v3042_v12 = vpack.c.bf16 %v1351_v8, %v1349_v7  ;;  %v1350_v14 = vld [vmem:[#allocation8 + $0x130] sm:$0xff] }
 0x1d4   : > { %v3044_v21 = vpack.c.bf16 %v1350_v14, %v1348_v13 }
 0x1d5   : > { %2993 = vmatpush1.bf16.msra.mxu0 %v2992_v22 }
 0x1d6   : > { %2995 = vmatprep.subr.bf16.mxu0 %v2994_v23  ;;  %3017 = vmatpush1.bf16.msra.mxu1 %v3016_v29  ;;  %v3046_v23 = vpack.c.bf16 %v1355_v20, %v1353_v19 }
 0x1d7   : > { %3019 = vmatprep.subr.bf16.mxu1 %v3018_v31  ;;  %v1359_v31 = vld [vmem:[#allocation8 + $0x178] sm:$0xff] }
 0x1d8   : > { %v3050_v33 = vpack.c.bf16 %v1359_v31, %v1357_v30 }
 0x1d9   : > { %2997 = vmatpush1.bf16.msra.mxu0 %v2996_v35  ;;  %v1358_v35 = vld [vmem:[#allocation8 + $0x170] sm:$0xff] }
 0x1da   : > { %2999 = vmatprep.subr.bf16.mxu0 %v2998_v36  ;;  %3021 = vmatpush1.bf16.msra.mxu1 %v3020_v39  ;;  %v1361_v36 = vld [vmem:[#allocation8 + $0x188] sm:$0xff]  ;;  %v3052_v38 = vpack.c.bf16 %v1358_v35, %v1356_v34 }
 0x1db   : > { %3023 = vmatprep.subr.bf16.mxu1 %v3022_v40  ;;  %v3054_v39 = vpack.c.bf16 %v1363_v37, %v1361_v36  ;;  %v1360_v40 = vld [vmem:[#allocation8 + $0x180] sm:$0xff] }
 0x1dc   : > { %v3056_v45 = vpack.c.bf16 %v1362_v41, %v1360_v40  ;;  %v1869_v37 = vld [vmem:[#allocation10] sm:$0xff]  ;;  %v1979_v41 = vld [vmem:[#allocation10 + $0x108] sm:$0xff] }
 0x1dd   : > { %3001 = vmatpush1.bf16.msra.mxu0 %v3000_v46  ;;  %v3058_v46 = vpack.c.bf16 %v1367_v43, %v1365_v42 }
 0x1de   : > { %3025 = vmatpush1.bf16.msra.mxu1 %v3024_v9  ;;  %v1364_v9 = vld [vmem:[#allocation8 + $0x1a0] sm:$0xff] }
 0x1df   : > { %3027 = vmatprep.subr.bf16.mxu1 %v3026_v47  ;;  %v1366_v47 = vld [vmem:[#allocation8 + $0x1b0] sm:$0xff] }
 0x1e0   : > { %1331 = vmatmul.mubr.f32.vlgmr.msra.gmra.mrb[10].mxu0 %v3964_v52  ;;  %v3060_v50 = vpack.c.bf16 %v1366_v47, %v1364_v9  ;;  %v1872_v9 = vld [vmem:[#allocation10 + $0x18] sm:$0xff]  ;;  %v1980_v47 = vld [vmem:[#allocation10 + $0x110] sm:$0xff] }
 0x1e1   : > { %1336 = vmatprep.mubr.f32.mxu0 %v3579_v0 }
 0x1e2   : > { %3029 = vmatpush1.bf16.msra.mxu1 %v3028_v53  ;;  %v1368_v53 = vld [vmem:[#allocation8 + $0x1c0] sm:$0xff] }
 0x1e3   : > { %3031 = vmatprep.subr.bf16.mxu1 %v3030_v54  ;;  %v1370_v54 = vld [vmem:[#allocation8 + $0x1d0] sm:$0xff] }
 0x1e4   : > { %1337 = vmatmul.mubr.f32.gmra.mrb[12].mxu0 %v3970_v57 }
 0x1e6   : > { %3033 = vmatpush1.bf16.msra.mxu1 %v3032_v44  ;;  %v3064_v44 = vpack.c.bf16 %v1370_v54, %v1368_v53  ;;  %v1874_v53 = vld [vmem:[#allocation10 + $0x28] sm:$0xff]  ;;  %v1982_v54 = vld [vmem:[#allocation10 + $0x120] sm:$0xff] }
 0x1e9   : > { %1474 = vmatmul.mubr.f32.vlgmr.msra.gmra.mrb[8].mxu1 %v3964_v52 }
 0x1ea   : > { %1479 = vmatprep.mubr.f32.mxu1 %v3579_v0 }
 0x1ed   : > { %1480 = vmatmul.mubr.f32.gmra.mrb[10].mxu1 %v3970_v57 }
 0x1ee   : > { %1550 = vmatprep.mubr.f32.mxu1 %v3579_v0 }
 0x2b3   : > { %v1332_v58 = vpop.f32.mrb[10].mxu0 }
 0x2b4   : > { %v1334_v59 = vpop.f32.mrb[11].mxu0 }
 0x2b7   : > { %v1338_v62 = vpop.f32.mrb[12].mxu0 }
 0x2b8   : > { %v3036_v63 = vpack.c.bf16 %v1338_v62, %v1332_v58  ;;  %v1340_v1 = vpop.f32.mrb[13].mxu0  ;;  %v3066_v58 = vpack.c.bf16 %v1375_v56, %v1373_v55  ;;  %v1725_v62 = vsub.s32 0, %v3910_v15  ;;  %v1983_v56 = vld [vmem:[#allocation10 + $0x128] sm:$0xff] }
 0x2b9   : > { %v3034_v2 = vpack.c.bf16 %v1340_v1, %v1334_v59  ;;  %v1372_v59 = vld [vmem:[#allocation8 + $0x1e0] sm:$0xff]  ;;  %v1733_v1 = vsub.s32 1, %v3910_v15 }
 0x2ba   : > { %v3068_v61 = vpack.c.bf16 %v1374_v60, %v1372_v59  ;;  %v1876_v59 = vld [vmem:[#allocation10 + $0x38] sm:$0xff]  ;;  %v1984_v60 = vld [vmem:[#allocation10 + $0x130] sm:$0xff] }
 0x2bb   : > { %3035 = vmatprep.subr.bf16.mxu1 %v3034_v2 }
 0x2bc   : > { %3037 = vmatpush1.bf16.msra.mxu1 %v3036_v63  ;;  %v3977_v11 = vpop.f32.mrb[8].mxu1  ;;  %v3999_v63 = vld [vmem:[%s4124_s5] sm:$0xff] }
 0x2bd   : > { %3039 = vmatprep.subr.bf16.mxu1 %v3038_v3  ;;  %v1477_v16 = vpop.f32.mrb[9].mxu1  ;;  %v1726_v3 = vrot.slane %v3999_v63, %v1725_v62  ;;  %v1734_v6 = vrot.slane %v3999_v63, %v1733_v1  ;;  %v1985_v62 = vld [vmem:[#allocation10 + $0x138] sm:$0xff] }
 0x2be   : > { %v3118_v1 = vpack.c.bf16 %v1985_v62, %v1984_v60 }
 0x2bf   : > { %2547 = vmatmul.mubr.msk.f32.vlgmr.msra.gmra.mrb[4].mxu1 %vm759_vm1, %v3914_v17 }
 0x2c0   : > { %3041 = vmatpush1.bf16.msra.mxu1 %v3040_v10  ;;  %v1481_v22 = vpop.f32.mrb[10].mxu1  ;;  %1556 = vmatprep.mubr.f32.mxu1 %v3579_v0 }
 0x2c1   : > { %3043 = vmatprep.subr.bf16.mxu1 %v3042_v12  ;;  %v3072_v28 = vpack.c.bf16 %v1481_v22, %v3977_v11  ;;  %v1483_v29 = vpop.f32.mrb[11].mxu1 }
 0x2c2   : > { %v3070_v18 = vpack.c.bf16 %v1483_v29, %v1477_v16 }
 0x2c3   : > { %2548 = vmatmul.mubr.msk.f32.gmra.mrb[6].mxu1 %vm759_vm1, %v3923_v27 }
 0x2c4   : > { %3045 = vmatpush1.bf16.msra.mxu1 %v3044_v21  ;;  %1627 = vmatprep.mubr.f32.mxu1 %v3579_v0 }
 0x2c5   : > { %3047 = vmatprep.subr.bf16.mxu1 %v3046_v23 }
 0x2c8   : > { %3049 = vmatpush1.bf16.msra.mxu1 %v3048_v32 }
 0x2c9   : > { %3051 = vmatprep.subr.bf16.mxu1 %v3050_v33 }
 0x2cc   : > { %3053 = vmatpush1.bf16.msra.mxu1 %v3052_v38  ;;  %v1870_v38 = vld [vmem:[#allocation10 + $0x8] sm:$0xff] }
 0x2cd   : > { %3055 = vmatprep.subr.bf16.mxu1 %v3054_v39  ;;  %v1978_v39 = vld [vmem:[#allocation10 + $0x100] sm:$0xff]  ;;  %v3074_v40 = vpack.c.bf16 %v1870_v38, %v1869_v37 }
 0x2ce   : > { %v3106_v43 = vpack.c.bf16 %v1979_v41, %v1978_v39 }
 0x2d0   : > { %3057 = vmatpush1.bf16.msra.mxu1 %v3056_v45  ;;  %3107 = vmatprep.subr.bf16.mxu0 %v3106_v43 }
 0x2d1   : > { %3059 = vmatprep.subr.bf16.mxu1 %v3058_v46  ;;  %v1871_v46 = vld [vmem:[#allocation10 + $0x10] sm:$0xff]  ;;  %3109 = vmatpush3.bf16.msra.mxu0 %v3106_v43 }
 0x2d2   : > { %v3078_v48 = vpack.c.bf16 %v1872_v9, %v1871_v46 }
 0x2d4   : > { %3061 = vmatpush1.bf16.msra.mxu1 %v3060_v50  ;;  %v3110_v50 = vpack.c.bf16 %v1981_v49, %v1980_v47 }
 0x2d5   : > { %3063 = vmatprep.subr.bf16.mxu1 %v3062_v51  ;;  %v1873_v51 = vld [vmem:[#allocation10 + $0x20] sm:$0xff] }
 0x2d6   : > { %3111 = vmatprep.subr.bf16.mxu0 %v3110_v50  ;;  %v3082_v55 = vpack.c.bf16 %v1874_v53, %v1873_v51  ;;  %v1780_v51 = vsub.s32 3, %v3910_v15 }
 0x2d7   : > { %3113 = vmatpush3.bf16.msra.mxu0 %v3110_v50 }
 0x2d8   : > { %3065 = vmatpush1.bf16.msra.mxu1 %v3064_v44  ;;  %v3114_v44 = vpack.c.bf16 %v1983_v56, %v1982_v54  ;;  %v1786_v54 = vsub.s32 4, %v3910_v15 }
 0x2d9   : > { %3067 = vmatprep.subr.bf16.mxu1 %v3066_v58  ;;  %v1875_v58 = vld [vmem:[#allocation10 + $0x30] sm:$0xff] }
 0x2da   : > { %3115 = vmatprep.subr.bf16.mxu0 %v3114_v44 }
 0x2db   : > { %3117 = vmatpush3.bf16.msra.mxu0 %v3114_v44  ;;  %v1781_v44 = vrot.slane %v3999_v63, %v1780_v51  ;;  %v2300_v51 = vsub.s32 2, %v3910_v15 }
 0x2dc   : > { %3069 = vmatpush1.bf16.msra.mxu1 %v3068_v61  ;;  %v3086_v61 = vpack.c.bf16 %v1876_v59, %v1875_v58  ;;  %3119 = vmatprep.subr.bf16.mxu0 %v3118_v1 }
 0x2dd   : > { %3071 = vmatprep.subr.bf16.mxu1 %v3070_v18 }
 0x2df   : > { %1628 = vmatmul.mubr.f32.vlgmr.msra.gmra.mrb[4].mxu1 %v3964_v52  ;;  %3121 = vmatpush3.bf16.msra.mxu0 %v3118_v1 }
 0x2e0   : > { %3073 = vmatpush1.bf16.msra.mxu1 %v3072_v28  ;;  %1633 = vmatprep.mubr.f32.mxu1 %v3579_v0 }
 0x2e1   : > { %3075 = vmatprep.subr.bf16.mxu1 %v3074_v40 }
 0x2e3   : > { %1634 = vmatmul.mubr.f32.gmra.mrb[6].mxu1 %v3970_v57 }
 0x2e4   : > { %1704 = vmatprep.mubr.f32.mxu1 %v3579_v0 }
 0x2e7   : > { %2549 = vmatmul.mubr.msk.f32.vlgmr.msra.gmra.mrb[4].mxu1 %vm759_vm1, %v3936_v4 }
 0x2e8   : > { %1710 = vmatprep.mubr.f32.mxu1 %v3579_v0  ;;  %3077 = vmatpush3.bf16.msra.mxu1 %v3074_v40 }
 0x2e9   : > { %3079 = vmatprep.subr.bf16.mxu1 %v3078_v48 }
 0x2eb   : > { %2550 = vmatmul.mubr.msk.f32.gmra.mrb[6].mxu1 %vm759_vm1, %v3945_v25 }
 0x2ec   : > { %3081 = vmatpush3.bf16.msra.mxu1 %v3078_v48 }
 0x2ed   : > { %3083 = vmatprep.subr.bf16.mxu1 %v3082_v55 }
 0x2f0   : > { %3085 = vmatpush3.bf16.msra.mxu1 %v3082_v55 }
 0x2f1   : > { %3087 = vmatprep.subr.bf16.mxu1 %v3086_v61 }
 0x2f4   : > { %3089 = vmatpush3.bf16.msra.mxu1 %v3086_v61  ;;  %v1787_v61 = vrot.slane %v3999_v63, %v1786_v54 }
 0x3ba   : > { %v1706_v2 = vpop.f32.mrb[4].mxu1 }
 0x3bb   : > { %v1708_v5 = vpop.f32.mrb[5].mxu1  ;;  %v4004_v0 = vadd.f32 %v1726_v3, %v1706_v2  ;;  %v1877_v2 = vld [vmem:[#allocation10 + $0x40] sm:$0xff] }
 0x3bc   : > { %v4008_v11 = vadd.f32 %v1734_v6, %v1708_v5  ;;  %v1986_v5 = vld [vmem:[#allocation10 + $0x140] sm:$0xff] }
 0x3bd   : > { %v1747_v20 = vmul.f32 %v4004_v0, %v4004_v0 }
 0x3be   : > { %v1712_v7 = vpop.f32.mrb[6].mxu1  ;;  %v1812_v21 = vmul.f32 %v4008_v11, %v4008_v11 }
 0x3bf   : > { %v4006_v8 = vadd.f32 %v1726_v3, %v1712_v7  ;;  %v1714_v10 = vpop.f32.mrb[7].mxu1  ;;  %v1878_v3 = vld [vmem:[#allocation10 + $0x48] sm:$0xff] }
 0x3c0   : > { %v4010_v12 = vadd.f32 %v1734_v6, %v1714_v10  ;;  %v3090_v6 = vpack.c.bf16 %v1878_v3, %v1877_v2  ;;  %v1987_v7 = vld [vmem:[#allocation10 + $0x148] sm:$0xff] }
 0x3c1   : > { %v1737_v13 = vadd.f32 %v4006_v8, %v4004_v0  ;;  %v1748_v14 = vmul.f32 %v4006_v8, %v4006_v8  ;;  %v3122_v10 = vpack.c.bf16 %v1987_v7, %v1986_v5 }
 0x3c2   : > { %v1802_v16 = vadd.f32 %v4010_v12, %v4008_v11  ;;  %v1813_v19 = vmul.f32 %v4010_v12, %v4010_v12  ;;  %3091 = vmatprep.subr.bf16.mxu1 %v3090_v6 }
 0x3c3   : > { %1738 = vadd.xlane.f32.xlu0 %v1737_v13  ;;  %v1749_v22 = vadd.f32 %v1748_v14, %v1747_v20  ;;  %3123 = vmatprep.subr.bf16.mxu0 %v3122_v10  ;;  %v1879_v13 = vld [vmem:[#allocation10 + $0x50] sm:$0xff]  ;;  %v1880_v14 = vld [vmem:[#allocation10 + $0x58] sm:$0xff] }
 0x3c4   : > { %1803 = vadd.xlane.f32.xlu1 %v1802_v16  ;;  %v1814_v23 = vadd.f32 %v1813_v19, %v1812_v21  ;;  %3093 = vmatpush3.bf16.msra.mxu1 %v3090_v6  ;;  %v1988_v16 = vld [vmem:[#allocation10 + $0x150] sm:$0xff]  ;;  %v3094_v19 = vpack.c.bf16 %v1880_v14, %v1879_v13  ;;  %v1989_v20 = vld [vmem:[#allocation10 + $0x158] sm:$0xff]  ;;  %v1881_v21 = vld [vmem:[#allocation10 + $0x60] sm:$0xff] }
 0x3c5   : > { %3125 = vmatpush3.bf16.msra.mxu0 %v3122_v10 }
 0x3c6   : > { %3095 = vmatprep.subr.bf16.mxu1 %v3094_v19 }
 0x3c7   : > { %1750 = vadd.xlane.f32.xlu0 %v1749_v22  ;;  %v1882_v22 = vld [vmem:[#allocation10 + $0x68] sm:$0xff] }
 0x3c8   : > { %1815 = vadd.xlane.f32.xlu1 %v1814_v23  ;;  %v3126_v23 = vpack.c.bf16 %v1989_v20, %v1988_v16  ;;  %3097 = vmatpush3.bf16.msra.mxu1 %v3094_v19 }
 0x3ca   : > { %3127 = vmatprep.subr.bf16.mxu0 %v3126_v23 }
 0x3cb   : > { %3129 = vmatpush3.bf16.msra.mxu0 %v3126_v23  ;;  %v1962_v23 = vld [vmem:[#allocation10 + $0x88] sm:$0xff] }
 0x450   : > { %v1739_v24 = vpop.xlane.xlu0 %1738 }
 0x451   : > { %v1740_v26 = vrot.slane %v1739_v24, 4 }
 0x453   : > { %v1741_v28 = vadd.f32 %v1740_v26, %v1739_v24  ;;  %v3098_v24 = vpack.c.bf16 %v1882_v22, %v1881_v21  ;;  %v1990_v26 = vld [vmem:[#allocation10 + $0x160] sm:$0xff] }
 0x454   : > { %v1751_v29 = vpop.xlane.xlu0 %1750  ;;  %v1961_v22 = vld [vmem:[#allocation10 + $0x80] sm:$0xff] }
 0x455   : > { %v1742_v30 = vrot.slane %v1741_v28, 2  ;;  %v1752_v31 = vrot.slane %v1751_v29, 4  ;;  %3099 = vmatprep.subr.bf16.mxu1 %v3098_v24 }
 0x456   : > { %3101 = vmatpush3.bf16.msra.mxu1 %v3098_v24 }
 0x457   : > { %v1753_v18 = vadd.f32 %v1752_v31, %v1751_v29  ;;  %v1743_v32 = vadd.f32 %v1742_v30, %v1741_v28  ;;  %v1991_v28 = vld [vmem:[#allocation10 + $0x168] sm:$0xff]  ;;  %v1883_v29 = vld [vmem:[#allocation10 + $0x70] sm:$0xff]  ;;  %v1884_v31 = vld [vmem:[#allocation10 + $0x78] sm:$0xff] }
 0x458   : > { %v3130_v30 = vpack.c.bf16 %v1991_v28, %v1990_v26 }
 0x459   : > { %v1754_v33 = vrot.slane %v1753_v18, 2  ;;  %v1744_v34 = vrot.slane %v1743_v32, 1 }
 0x45a   : > { %3131 = vmatprep.subr.bf16.mxu0 %v3130_v30 }
 0x45b   : > { %v1745_v35 = vadd.f32 %v1744_v34, %v1743_v32  ;;  %v1755_v36 = vadd.f32 %v1754_v33, %v1753_v18  ;;  %v1992_v18 = vld [vmem:[#allocation10 + $0x170] sm:$0xff]  ;;  %v1993_v32 = vld [vmem:[#allocation10 + $0x178] sm:$0xff]  ;;  %v3102_v33 = vpack.c.bf16 %v1884_v31, %v1883_v29  ;;  %3133 = vmatpush3.bf16.msra.mxu0 %v3130_v30 }
 0x45c   : > { %v3134_v34 = vpack.c.bf16 %v1993_v32, %v1992_v18  ;;  %v3142_v18 = vpack.c.bf16 %v1962_v23, %v1961_v22  ;;  %v1963_v32 = vld [vmem:[#allocation10 + $0x90] sm:$0xff] }
 0x45d   : > { %3208 = vpush %v1745_v35  ;;  %v1756_v42 = vrot.slane %v1755_v36, 1  ;;  %3103 = vmatprep.subr.bf16.mxu1 %v3102_v33  ;;  %v1804_v35 = vpop.xlane.xlu1 %1803 }
 0x45e   : > { %3135 = vmatprep.subr.bf16.mxu0 %v3134_v34  ;;  %3105 = vmatpush3.bf16.msra.mxu1 %v3102_v33  ;;  %v1805_v37 = vrot.slane %v1804_v35, 4  ;;  %v1964_v33 = vld [vmem:[#allocation10 + $0x98] sm:$0xff] }
 0x45f   : > { %v1757_v45 = vadd.f32 %v1756_v42, %v1755_v36  ;;  %3137 = vmatpush3.bf16.msra.mxu0 %v3134_v34  ;;  %v3146_v34 = vpack.c.bf16 %v1964_v33, %v1963_v32 }
 0x460   : > { %v1806_v39 = vadd.f32 %v1805_v37, %v1804_v35  ;;  %v1965_v35 = vld [vmem:[#allocation10 + $0xa0] sm:$0xff]  ;;  %v1967_v37 = vld [vmem:[#allocation10 + $0xb0] sm:$0xff] }
 0x461   : > { %3210 = vpush %v1757_v45  ;;  %v1816_v36 = vpop.xlane.xlu1 %1815 }
 0x462   : > { %v1817_v38 = vrot.slane %v1816_v36, 4  ;;  %v1807_v41 = vrot.slane %v1806_v39, 2 }
 0x464   : > { %v1818_v40 = vadd.f32 %v1817_v38, %v1816_v36  ;;  %v1808_v45 = vadd.f32 %v1807_v41, %v1806_v39  ;;  %v1966_v36 = vld [vmem:[#allocation10 + $0xa8] sm:$0xff]  ;;  %v1968_v38 = vld [vmem:[#allocation10 + $0xb8] sm:$0xff] }
 0x465   : > { %v3154_v39 = vpack.c.bf16 %v1968_v38, %v1967_v37  ;;  %v1970_v41 = vld [vmem:[#allocation10 + $0xc8] sm:$0xff] }
 0x466   : > { %v1819_v42 = vrot.slane %v1818_v40, 2  ;;  %v1809_v9 = vrot.slane %v1808_v45, 1 }
 0x468   : > { %v1820_v46 = vadd.f32 %v1819_v42, %v1818_v40  ;;  %v1810_v49 = vadd.f32 %v1809_v9, %v1808_v45  ;;  %v1969_v40 = vld [vmem:[#allocation10 + $0xc0] sm:$0xff]  ;;  %v1972_v45 = vld [vmem:[#allocation10 + $0xd8] sm:$0xff]  ;;  %v1974_v9 = vld [vmem:[#allocation10 + $0xe8] sm:$0xff] }
 0x469   : > { %v3158_v42 = vpack.c.bf16 %v1970_v41, %v1969_v40 }
 0x46a   : > { %v1821_v47 = vrot.slane %v1820_v46, 1 }
 0x46c   : > { %v1822_v50 = vadd.f32 %v1821_v47, %v1820_v46 }
 0x48e   : > { %s3209_s9 = spop %3208 }
 0x48f   : > { %s1761_s12 = smul.f32 0.00048828125, %s3209_s9 }
 0x491   : > { %s1765_s10 = smul.f32 %s1761_s12, %s1761_s12  ;;  %v1768_v53 = vstv %s1761_s12 }
 0x492   : > { %s3211_s14 = spop %3210  ;;  %v1769_v55 = vsub.f32 %v4004_v0, %v1768_v53  ;;  %v1770_v56 = vsub.f32 %v4006_v8, %v1768_v53  ;;  %v2301_v53 = vrot.slane %v3999_v63, %v2300_v51 }
 0x493   : > { %s1764_s16 = smul.f32 0.00048828125, %s3211_s14 }
 0x495   : > { %s1766_s15 = ssub.f32 %s1764_s16, %s1765_s10 }
 0x497   : > { %s1767_s11 = smax.f32 %s3580_s3, %s1766_s15 }
 0x498   : > { %s1771_s7 = sadd.f32 1e-06, %s1767_s11 }
 0x49a   : > { %v1772_v43 = vstv %s1771_s7 }
 0x49b   : > { %3318 = vrsqrt.f32 %v1772_v43  ;;  %v1971_v43 = vld [vmem:[#allocation10 + $0xd0] sm:$0xff] }
 0x49c   : > { %v3162_v46 = vpack.c.bf16 %v1972_v45, %v1971_v43 }
 0x4a5   : > { %v3319_v48 = vpop.eup %3318 }
 0x4a6   : > { %3212 = vpush %v3319_v48  ;;  %v1975_v48 = vld [vmem:[#allocation10 + $0xf0] sm:$0xff] }
 0x4a7   : > { %3214 = vpush %v1810_v49  ;;  %v1976_v49 = vld [vmem:[#allocation10 + $0xf8] sm:$0xff] }
 0x4a8   : > { %3216 = vpush %v1822_v50  ;;  %v3170_v50 = vpack.c.bf16 %v1976_v49, %v1975_v48 }
 0x4d7   : > { %s3213_s20 = spop %3212 }
 0x4d8   : > { %v1775_v58 = vstv %s3213_s20  ;;  %s3215_s0 = spop %3214 }
 0x4d9   : > { %v1776_v59 = vmul.f32 %v1775_v58, %v1769_v55  ;;  %v1777_v60 = vmul.f32 %v1775_v58, %v1770_v56  ;;  %s4031_s26 = smul.f32 0.00048828125, %s3215_s0  ;;  %s3217_s19 = spop %3216 }
 0x4da   : > { %s1829_s29 = smul.f32 0.00048828125, %s3217_s19  ;;  %s2567_s19 = sshll.u32 %s3640_s25, 8 }
 0x4db   : > { %v1782_v62 = vmul.f32 %v1781_v44, %v1776_v59  ;;  %v1783_v1 = vmul.f32 %v1781_v44, %v1777_v60  ;;  %s1830_s17 = smul.f32 %s4031_s26, %s4031_s26  ;;  %s2370_s25 = scalar_lea.sflag [#allocation4], %s3856_s13 }
 0x4dd   : > { %v1788_v0 = vadd.f32 %v1787_v61, %v1782_v62  ;;  %v1789_v8 = vadd.f32 %v1787_v61, %v1783_v1  ;;  %s1831_s2 = ssub.f32 %s1829_s29, %s1830_s17  ;;  %s352_s29 = scalar_lea.vmem [#allocation11], %s3859_s18 }
 0x4de   : > { %s2383_s17 = sshll.u32 %s352_s29, 4  ;;  %s4075_s17 = int_to_ptr.vmem [resolvable:$true] %s2383_s17 }
 0x4df   : > { %v2551_v2 = vmul.f32 -1.442695, %v1788_v0  ;;  %v2552_v3 = vmul.f32 -1.442695, %v1789_v8  ;;  %s1832_s27 = smax.f32 %s3580_s3, %s1831_s2  ;;  %s3488_s18 = scalar_lea.vmem %s4075_s17, 256 }
 0x4e0   : > { %s1836_s4 = sadd.f32 1e-06, %s1832_s27  ;;  %p3489_p1 = scmp.ne.s32.totalorder %s4075_s17, %s3488_s18 }
 0x4e1   : > { %3320 = vpow2.f32 %v2551_v2 }
 0x4e2   : > { %3322 = vpow2.f32 %v2552_v3  ;;  %v1837_v5 = vstv %s1836_s4  ;;  %s4073_s4 = scalar_lea.hbm %s4125_s6, %s2567_s19  ;;  %p3490_p4 = pnand %p3489_p1, %p3764_p5 }
 0x4e3   : > { %3324 = vrsqrt.f32 %v1837_v5 }
 0x4e4   : > { %p3491_p0 = pneg %p3490_p4 }
 0x4eb   : > { %v3321_v6 = vpop.eup %3320 }
 0x4ec   : > { %v3323_v7 = vpop.eup %3322  ;;  %v1796_v10 = vadd.f32 1.0, %v3321_v6 }
 0x4ed   : > { %v3325_v13 = vpop.eup %3324  ;;  %v1797_v14 = vadd.f32 1.0, %v3323_v7 }
 0x4ee   : > { %3326 = vrcp.f32 %v1796_v10  ;;  %3218 = vpush %v3325_v13 }
 0x4ef   : > { %3328 = vrcp.f32 %v1797_v14 }
 0x4f8   : > { %v3327_v16 = vpop.eup %3326 }
 0x4f9   : > { %v3329_v19 = vpop.eup %3328  ;;  %v1867_v20 = vmul.f32 %v3327_v16, %v3964_v52 }
 0x4fa   : > { %v1868_v21 = vmul.f32 %v3329_v19, %v3970_v57 }
 0x4fb   : > { %2771 = vmatprep.mubr.f32.mxu1 %v1867_v20  ;;  %2806 = vmatprep.mubr.f32.mxu0 %v1867_v20 }
 0x4fc   : > { %2772 = vmatmul.mubr.f32.vlgmr.msra.gmra.mrb[12].mxu1 %v1868_v21  ;;  %2807 = vmatmul.mubr.f32.vlgmr.msra.gmra.mrb[14].mxu0 %v1868_v21 }
 0x4fd   : > { %2813 = vmatprep.mubr.msk.f32.mxu0 %vm759_vm1, %v3914_v17  ;;  %v3150_v17 = vpack.c.bf16 %v1966_v36, %v1965_v35 }
 0x51f   : > { %s3219_s9 = spop %3218 }
 0x520   : > { %v1840_v22 = vstv %s3219_s9  ;;  %s3581_s9 = smov [#allocation11]  }
 0x5cf   : > { %v2773_v24 = vpop.f32.mrb[12].mxu1  ;;  %v2808_v26 = vpop.f32.mrb[14].mxu0 }
 0x5d0   : > { %v1951_v28 = vpop.f32.mrb[13].mxu1  ;;  %v2060_v29 = vpop.f32.mrb[15].mxu0 }
 0x5d1   : > { %v3138_v30 = vpack.c.bf16 %v2773_v24, %v1951_v28  ;;  %v3174_v31 = vpack.c.bf16 %v2808_v26, %v2060_v29  ;;  %v1851_v29 = vsub.s32 6, %v3910_v15 }
 0x5d3   : > { %3139 = vmatprep.subr.bf16.mxu0 %v3138_v30 }
 0x5d4   : > { %3141 = vmatpush3.bf16.msra.mxu0 %v3138_v30 }
 0x5d5   : > { %3143 = vmatprep.subr.bf16.mxu0 %v3142_v18 }
 0x5d7   : > { %2814 = vmatmul.mubr.msk.f32.vlgmr.msra.gmra.mrb[8].mxu0 %vm759_vm1, %v3923_v27  ;;  %v1973_v27 = vld [vmem:[#allocation10 + $0xe0] sm:$0xff] }
 0x5d8   : > { %3145 = vmatpush3.bf16.msra.mxu0 %v3142_v18  ;;  %2848 = vmatprep.mubr.f32.mxu0 %v1867_v20  ;;  %v3166_v47 = vpack.c.bf16 %v1974_v9, %v1973_v27  ;;  %v1833_v20 = vstv %s4031_s26  ;;  %v1852_v18 = vrot.slane %v3999_v63, %v1851_v29  ;;  %v2559_v27 = vld [vmem:[%s4124_s5 + $0x8] ss:$0 sm:$0xff] }
 0x5d9   : > { %3147 = vmatprep.subr.bf16.mxu0 %v3146_v34  ;;  %v1834_v23 = vsub.f32 %v4008_v11, %v1833_v20  ;;  %v1835_v24 = vsub.f32 %v4010_v12, %v1833_v20  ;;  %v2347_v11 = vsub.s32 7, %v3910_v15 }
 0x5db   : > { %v1841_v26 = vmul.f32 %v1840_v22, %v1834_v23  ;;  %v1842_v30 = vmul.f32 %v1840_v22, %v1835_v24  ;;  %v2348_v41 = vrot.slane %v3999_v63, %v2347_v11 }
 0x5dc   : > { %3149 = vmatpush3.bf16.msra.mxu0 %v3146_v34 }
 0x5dd   : > { %3151 = vmatprep.subr.bf16.mxu0 %v3150_v17 }
 0x5e0   : > { %3153 = vmatpush3.bf16.msra.mxu0 %v3150_v17 }
 0x5e1   : > { %3155 = vmatprep.subr.bf16.mxu0 %v3154_v39 }
 0x5e4   : > { %3157 = vmatpush3.bf16.msra.mxu0 %v3154_v39 }
 0x5e5   : > { %3159 = vmatprep.subr.bf16.mxu0 %v3158_v42 }
 0x5e8   : > { %3161 = vmatpush3.bf16.msra.mxu0 %v3158_v42 }
 0x5e9   : > { %3163 = vmatprep.subr.bf16.mxu0 %v3162_v46 }
 0x5ec   : > { %3165 = vmatpush3.bf16.msra.mxu0 %v3162_v46 }
 0x5ed   : > { %3167 = vmatprep.subr.bf16.mxu0 %v3166_v47 }
 0x5f0   : > { %3169 = vmatpush3.bf16.msra.mxu0 %v3166_v47 }
 0x5f1   : > { %3171 = vmatprep.subr.bf16.mxu0 %v3170_v50 }
 0x5f4   : > { %3173 = vmatpush3.bf16.msra.mxu0 %v3170_v50 }
 0x5f5   : > { %3175 = vmatprep.subr.bf16.mxu0 %v3174_v31 }
 0x5f7   : > { %2849 = vmatmul.mubr.f32.vlgmr.msra.gmra.mrb[8].mxu0 %v1868_v21  ;;  %v1845_v21 = vsub.s32 5, %v3910_v15 }
 0x5f8   : > { %3177 = vmatpush3.bf16.msra.mxu0 %v3174_v31  ;;  %2855 = vmatprep.mubr.msk.f32.mxu0 %vm759_vm1, %v3936_v4 }
 0x5f9   : > { %v1846_v28 = vrot.slane %v3999_v63, %v1845_v21 }
 0x5fb   : > { %v1847_v31 = vmul.f32 %v1846_v28, %v1841_v26  ;;  %v1848_v32 = vmul.f32 %v1846_v28, %v1842_v30 }
 0x5fd   : > { %v1853_v33 = vadd.f32 %v1852_v18, %v1847_v31  ;;  %v1854_v34 = vadd.f32 %v1852_v18, %v1848_v32 }
 0x5ff   : > { %2856 = vmatmul.mubr.msk.f32.vlgmr.msra.gmra.mrb[8].mxu0 %vm759_vm1, %v3945_v25  ;;  %v2553_v35 = vmul.f32 -1.442695, %v1853_v33  ;;  %v2554_v36 = vmul.f32 -1.442695, %v1854_v34 }
 0x6d2   : > { %v2857_v54 = vpop.f32.mrb[8].mxu0 }
 0x6d3   : > { %v2303_v55 = vadd.f32 %v2857_v54, %v2301_v53  ;;  %v2285_v56 = vpop.f32.mrb[9].mxu0 }
 0x6d4   : > { %v2302_v44 = vadd.f32 %v2301_v53, %v2285_v56 }
 0x6d5   : > { %v2315_v58 = vmul.f32 %v2303_v55, %v2303_v55 }
 0x6d6   : > { %v2304_v59 = vadd.f32 %v2303_v55, %v2302_v44  ;;  %v2314_v60 = vmul.f32 %v2302_v44, %v2302_v44 }
 0x6d8   : > { %2305 = vadd.xlane.f32.xlu0 %v2304_v59  ;;  %v2316_v61 = vadd.f32 %v2315_v58, %v2314_v60 }
 0x6da   : > { %2317 = vadd.xlane.f32.xlu1 %v2316_v61 }
 0x765   : > { %v2306_v62 = vpop.xlane.xlu0 %2305 }
 0x766   : > { %v2307_v1 = vrot.slane %v2306_v62, 4 }
 0x767   : > { %v2318_v4 = vpop.xlane.xlu1 %2317 }
 0x768   : > { %v2308_v0 = vadd.f32 %v2307_v1, %v2306_v62  ;;  %v2319_v8 = vrot.slane %v2318_v4, 4 }
 0x76a   : > { %v2309_v25 = vrot.slane %v2308_v0, 2  ;;  %v2320_v2 = vadd.f32 %v2319_v8, %v2318_v4 }
 0x76c   : > { %v2310_v3 = vadd.f32 %v2309_v25, %v2308_v0  ;;  %v2321_v5 = vrot.slane %v2320_v2, 2 }
 0x76e   : > { %v2322_v6 = vadd.f32 %v2321_v5, %v2320_v2  ;;  %v2311_v7 = vrot.slane %v2310_v3, 1 }
 0x770   : > { %v2312_v10 = vadd.f32 %v2311_v7, %v2310_v3  ;;  %v2323_v13 = vrot.slane %v2322_v6, 1 }
 0x772   : > { %3220 = vpush %v2312_v10  ;;  %v2324_v14 = vadd.f32 %v2323_v13, %v2322_v6 }
 0x774   : > { %3222 = vpush %v2324_v14 }
 0x7a3   : > { %s3221_s12 = spop %3220 }
 0x7a4   : > { %s4048_s10 = smul.f32 0.00048828125, %s3221_s12  ;;  %s3492_s12 = sshll.u32 %s3581_s9, 4  ;;  %s3493_s12 = int_to_ptr.vmem [resolvable:$false] %s3492_s12 }
 0x7a5   : > { %s3223_s14 = spop %3222  ;;  %p3495_p8 = scmp.lt.s32.totalorder %s4075_s17, %s3493_s12 }
 0x7a6   : > { %s2332_s16 = smul.f32 %s4048_s10, %s4048_s10  ;;  %v2335_v17 = vstv %s4048_s10  ;;  %s3494_s10 = scalar_lea.vmem %s3493_s12, 512 }
 0x7a7   : > { %s2331_s15 = smul.f32 0.00048828125, %s3223_s14  ;;  %v2336_v39 = vsub.f32 %v2302_v44, %v2335_v17  ;;  %v2337_v40 = vsub.f32 %v2303_v55, %v2335_v17  ;;  %p3496_p6 = scmp.lt.s32.totalorder %s3494_s10, %s3488_s18 }
 0x7a9   : > { %s2333_s11 = ssub.f32 %s2331_s15, %s2332_s16  ;;  %p3497_p10 = por %p3496_p6, %p3495_p8 }
 0x7ab   : > { %s2334_s7 = smax.f32 %s3580_s3, %s2333_s11  ;;  %p3498_p3 = pnand %p3497_p10, %p3491_p0 }
 0x7ac   : > { %s2338_s20 = sadd.f32 1e-06, %s2334_s7 }
 0x7ae   : > { %v2339_v16 = vstv %s2338_s20 }
 0x7af   : > { %3330 = vrsqrt.f32 %v2339_v16 }
 0x7b0   : > { %3332 = vpow2.f32 %v2553_v35 }
 0x7b1   : > { %3334 = vpow2.f32 %v2554_v36 }
 0x7b9   : > { %v3331_v19 = vpop.eup %3330 }
 0x7ba   : > { %3224 = vpush %v3331_v19  ;;  %v3333_v12 = vpop.eup %3332 }
 0x7bb   : > { %v3335_v37 = vpop.eup %3334  ;;  %v1861_v38 = vadd.f32 1.0, %v3333_v12 }
 0x7bc   : > { %v1862_v42 = vadd.f32 1.0, %v3335_v37 }
 0x7bd   : > { %3336 = vrcp.f32 %v1861_v38 }
 0x7be   : > { %3338 = vrcp.f32 %v1862_v42 }
 0x7c7   : > { %v3337_v49 = vpop.eup %3336 }
 0x7c8   : > { %v3339_v63 = vpop.eup %3338  ;;  %v2361_v50 = vsub.f32 1.0, %v3337_v49  ;;  %v2359_v55 = vmul.f32 %v3337_v49, %v3964_v52 }
 0x7c9   : > { %v2362_v53 = vsub.f32 1.0, %v3339_v63  ;;  %v2360_v44 = vmul.f32 %v3339_v63, %v3970_v57 }
 0x7eb   : > { %s3225_s3 = spop %3224 }
 0x7ec   : > { %v2342_v43 = vstv %s3225_s3 }
 0x7ed   : > { %v2343_v45 = vmul.f32 %v2342_v43, %v2336_v39  ;;  %v2344_v46 = vmul.f32 %v2342_v43, %v2337_v40 }
 0x7ef   : > { %v2349_v15 = vmul.f32 %v2348_v41, %v2343_v45  ;;  %v2350_v9 = vmul.f32 %v2348_v41, %v2344_v46 }
 0x7f1   : > { %v2355_v47 = vadd.f32 %v2559_v27, %v2349_v15  ;;  %v2356_v48 = vadd.f32 %v2559_v27, %v2350_v9 }
 0x7f3   : > { %3340 = vtanh.f32 %v2355_v47 }
 0x7f4   : > { %3342 = vtanh.f32 %v2356_v48 }
 0x7fd   : > { %v3341_v51 = vpop.eup %3340 }
 0x7fe   : > { %v3343_v54 = vpop.eup %3342  ;;  %v2363_v56 = vmul.f32 %v3341_v51, %v2361_v50 }
 0x7ff   : > { %v2364_v58 = vmul.f32 %v3343_v54, %v2362_v53 }
 0x800   : > { %v2365_v59 = vadd.f32 %v2363_v56, %v2359_v55 }
 0x801   : > { %v2366_v60 = vadd.f32 %v2364_v58, %v2360_v44 }
 0x802   : > { %2367 = vst [vmem:[%s352_s29] sm:$0xff] %v2365_v59 }
 0x803   : > { %2368 = vst [vmem:[%s352_s29 + $0x8] sm:$0xff] %v2366_v60 }
 0x804   : > { %3501 = shalt.err (!%p3498_p3)
}
 0x805   : > { %s3502_s14 = scalar_lea.hbm %s4073_s4, 256  ;;  %s3506_s11 = scalar_lea.hbm %s4125_s6, 512 }
 0x806   : > { %p3503_p9 = scmp.ne.s32.totalorder %s4073_s4, %s3502_s14  ;;  %p3507_p7 = scmp.lt.u32.totalorder %s4073_s4, %s4125_s6 }
 0x807   : > { %p3508_p12 = scmp.lt.u32.totalorder %s3506_s11, %s3502_s14  ;;  %p3510_p1 = scmp.lt.u32.totalorder %s3502_s14, %s4073_s4 }
 0x808   : > { %p3504_p13 = pnand %p3503_p9, %p3764_p5 }
 0x809   : > { %p3509_p2 = por %p3508_p12, %p3507_p7 }
 0x80a   : > { %p3505_p11 = pneg %p3504_p13 }
 0x80b   : > { %p3511_p4 = por %p3510_p1, %p3509_p2 }
 0x80d   : > { %p3512_p0 = pnand %p3511_p4, %p3505_p11 }
 0x80f   : > { %3515 = shalt.err (!%p3512_p0)
}
 0x810   : > { %s3582_s3 = smov 128   ;;  %s3583_s0 = smov 8  }
 0x811   : > { %3242 = dma.vmem_to_hbm [thread:$0]  (%p3764_p5), %s4075_s17, 256, %s4073_s4, %s2370_s25, %s3582_s3, %s3582_s3, %s3583_s0  }
 0x812 PF: > { %s2398_s26 = sand.u32 1, %s3554_s21   ;;  %p4158_p8 = scmp.ne.s32.totalorder %s4138_s28, 0 }
 0x813   : > { %p4159_p6 = scmp.ge.s32.totalorder %s3566_s24, 2  ;;  %s2399_s19 = scalar_lea.sflag [#allocation4], %s2398_s26 }
 0x815   : > { %p3262_p10 = pnand %p4159_p6, %p4158_p8 }
 0x817   : > { %3549 = dma.done.wait (!%p3262_p10), %s2399_s19, 256  }
 0x818   : > { %3551 = vsyncadd (!%p3262_p10), %s2399_s19, 4294967040  ;;  %s4160_s29 = sld [smem:[#allocation17_spill]]  ;;  %p23_p3 = scmp.ge.s32.totalorder %s3750_s30, 4  }
 0x819   : > { %s4161_s21 = smov %s3558_s22  ;;  %s4162_s22 = smov %s3562_s23 }
 0x81a   : > { %s4164_s24 = smov %s3750_s30  ;;  %25 = sbr.rel (!%p23_p3) target bundleno = 13 (0xd), region = 120 }
 0x81e   : > { %s4163_s23 = smov %s4160_s29 }
 0x821   :  { %2404 = vsyncpa [#allocation3], 1 }
 0x822   :  { %2406 = vsyncpa [#allocation3 + $0x1], 1 }
 0x823   :  { %2407 = vsyncpa [#allocation6], 1 }
 0x824   :  { %2409 = vsyncpa [#allocation6 + $0x1], 1 }
 0x825   :  { %2410 = vsyncpa [#allocation9], 1 }
 0x826   :  { %2411 = vsyncpa [#allocation4], 1 }
 0x827   :  { %2413 = vsyncpa [#allocation4 + $0x1], 1 }

</bundles_post_ra>
